<compile_context>
chip_gen: v6e
topology: v6e:2x2x1
jax: 0.10.0
libtpu: 0.0.40
codegen_flags: <defaults>
</compile_context>

<pallas_src>
import functools

import jax
import jax.numpy as jnp
from jax.experimental import pallas as pl
from jax.experimental.pallas import tpu as pltpu

LEAKY_SLOPE = 0.01        # nn.LeakyReLU default negative_slope
H1, H2 = 150, 50          # logical hidden widths (PyTorch module)
H1P, H2P = 256, 128       # lane-padded hidden widths


def _round_up(x, m):
    return ((x + m - 1) // m) * m


def _cdiv(a, b):
    return -(-a // b)


def _vmem_limit_bytes():
    """Generation-aware scoped-VMEM limit (~100 MiB on 128 MiB parts, ~51 MiB on 64 MiB)."""
    cap = 64 * 1024 * 1024                       # conservative fallback (v7x per-core)
    try:
        info = pltpu.get_tpu_info()
        cap = int(getattr(info, "vmem_capacity_bytes", cap)) or cap
    except Exception:
        pass
    limit = min(cap * 4 // 5, cap - 12 * 1024 * 1024, 100 * 1024 * 1024)
    return max(int(limit), 16 * 1024 * 1024)


def _choose_tb(B, tb_target):
    """Pick a batch tile: minimize padding (prefer exact divisors / a single
    full-extent tile), keep 8-row alignment, and keep >=2 grid steps for large
    B so both v7x TensorCores get work."""
    n_min = max(1, _cdiv(B, max(int(tb_target), 1)))
    if B >= 512:
        n_min = max(n_min, 2)
    for n in range(n_min, min(4 * n_min, B) + 1):
        tb = _cdiv(B, n)
        if B % n == 0 and (n == 1 or tb % 8 == 0):
            return tb, n                          # no batch padding needed
    tb = _round_up(_cdiv(B, n_min), 16)           # fallback: minimal 16-aligned pad
    return tb, _cdiv(B, tb)


# --------------------------------------------------------------------------
# Kernels
# --------------------------------------------------------------------------

def _cls_head_kernel(x_ref, w1_ref, b1_ref, w2_ref, b2_ref, w3_ref, b3_ref, o_ref):
    """Resident-weights path: whole (padded) weight stack lives in VMEM."""
    xb = x_ref[...].astype(jnp.bfloat16)          # cast in VMEM; HBM keeps f32 x
    h1 = jnp.dot(xb, w1_ref[...], preferred_element_type=jnp.float32) + b1_ref[...]
    h1 = jnp.where(h1 > 0, h1, LEAKY_SLOPE * h1)  # LeakyReLU (dropout = identity, eval)
    h2 = jnp.dot(h1.astype(jnp.bfloat16), w2_ref[...],
                 preferred_element_type=jnp.float32) + b2_ref[...]
    h2 = jnp.where(h2 > 0, h2, LEAKY_SLOPE * h2)
    out = jnp.dot(h2.astype(jnp.bfloat16), w3_ref[...],
                  preferred_element_type=jnp.float32) + b3_ref[...]
    o_ref[...] = out.astype(o_ref.dtype)


def _cls_head_stream_kernel(x_ref, w1_ref, b1_ref, w2_ref, b2_ref, w3_ref, b3_ref,
                            o_ref, acc_ref, *, d_total, tk):
    """Streamed-K path: layer-1 reduction tiled over the trailing grid axis."""
    k = pl.program_id(1)

    @pl.when(k == 0)
    def _():
        acc_ref[...] = jnp.zeros_like(acc_ref)

    xb = x_ref[...].astype(jnp.bfloat16)
    if d_total % tk != 0:  # static: mask the partial last K block (garbage-safe)
        col = k * tk + jax.lax.broadcasted_iota(jnp.int32, xb.shape, 1)
        xb = jnp.where(col < d_total, xb, jnp.bfloat16(0))
    acc_ref[...] += jnp.dot(xb, w1_ref[...], preferred_element_type=jnp.float32)

    @pl.when(k == pl.num_programs(1) - 1)
    def _():
        h1 = acc_ref[...] + b1_ref[...]
        h1 = jnp.where(h1 > 0, h1, LEAKY_SLOPE * h1)
        h2 = jnp.dot(h1.astype(jnp.bfloat16), w2_ref[...],
                     preferred_element_type=jnp.float32) + b2_ref[...]
        h2 = jnp.where(h2 > 0, h2, LEAKY_SLOPE * h2)
        out = jnp.dot(h2.astype(jnp.bfloat16), w3_ref[...],
                      preferred_element_type=jnp.float32) + b3_ref[...]
        o_ref[...] = out.astype(o_ref.dtype)


# --------------------------------------------------------------------------
# Wrappers
# --------------------------------------------------------------------------

def prepare_params(params, *, force_stream=None, tk=512):
    """One-off padding + bf16 cast of the weights (hoisted out of the per-call path)."""
    w1, b1 = params["w1"], params["b1"]
    w2, b2 = params["w2"], params["b2"]
    w3, b3 = params["w3"], params["b3"]
    D = w1.shape[0]
    C = w3.shape[1]
    Cp = _round_up(C, 128)
    vmem_limit = _vmem_limit_bytes()
    # Stream w1 over a K grid axis when its resident (worst-case double-buffered)
    # VMEM footprint would eat too much of the budget and collapse the batch tile.
    if force_stream is None:
        stream = (D * H1P * 2 * 2) > (vmem_limit // 3)
    else:
        stream = bool(force_stream)
    dk = _round_up(D, tk) if stream else D        # K-pad w1 once for exact K tiling
    return {
        "mode": "stream" if stream else "resident",
        "tk": int(tk), "D": int(D), "C": int(C), "vmem_limit": int(vmem_limit),
        "w1": jnp.pad(w1, ((0, dk - D), (0, H1P - H1))).astype(jnp.bfloat16),
        "b1": jnp.pad(b1, (0, H1P - H1)).astype(jnp.float32)[None, :],
        "w2": jnp.pad(w2, ((0, H1P - H1), (0, H2P - H2))).astype(jnp.bfloat16),
        "b2": jnp.pad(b2, (0, H2P - H2)).astype(jnp.float32)[None, :],
        "w3": jnp.pad(w3, ((0, H2P - H2), (0, Cp - C))).astype(jnp.bfloat16),
        "b3": jnp.pad(b3, (0, Cp - C)).astype(jnp.float32)[None, :],
    }


def _resident_call(x2d, pp, weight_buffers):
    B, D = x2d.shape
    H1p, H2p, Cp = pp["w1"].shape[1], pp["w2"].shape[1], pp["w3"].shape[1]
    vmem_limit = pp["vmem_limit"]

    weight_bytes = weight_buffers * ((D * H1p + H1p * H2p + H2p * Cp) * 2
                                     + (H1p + H2p + Cp) * 4)
    # per-row VMEM: f32 x double-buffer + in-kernel bf16 copy + f32 out double-buffer
    # + h1/h2 temporaries.
    per_row = 10 * D + 8 * Cp + 6 * H1p + 6 * H2p + 512
    budget = max(vmem_limit - weight_bytes - 4 * 1024 * 1024, per_row * 16)
    tb_target = max(16, min(budget // per_row, 4096))
    TB, n_tiles = _choose_tb(B, tb_target)
    Bp = TB * n_tiles
    xin = x2d if Bp == B else jnp.pad(x2d, ((0, Bp - B), (0, 0)))

    if weight_buffers == 1:
        def wspec(shape):
            return pl.BlockSpec(shape, lambda i: (0, 0), pipeline_mode=pl.Buffered(1))
    else:
        def wspec(shape):
            return pl.BlockSpec(shape, lambda i: (0, 0))

    flops = 2 * Bp * (D * H1p + H1p * H2p + H2p * Cp)
    bytes_accessed = (Bp * D * x2d.dtype.itemsize
                      + (D * H1p + H1p * H2p + H2p * Cp) * 2
                      + (H1p + H2p + Cp) * 4 + Bp * Cp * 4)

    out = pl.pallas_call(
        _cls_head_kernel,
        out_shape=jax.ShapeDtypeStruct((Bp, Cp), jnp.float32),
        grid=(n_tiles,),
        in_specs=[
            pl.BlockSpec((TB, D), lambda i: (i, 0)),      # x : batch-tiled, full-D block
            wspec((D, H1p)), wspec((1, H1p)),             # w1/b1 : resident
            wspec((H1p, H2p)), wspec((1, H2p)),           # w2/b2 : resident
            wspec((H2p, Cp)), wspec((1, Cp)),             # w3/b3 : resident
        ],
        out_specs=pl.BlockSpec((TB, Cp), lambda i: (i, 0)),
        compiler_params=pltpu.CompilerParams(
            dimension_semantics=("parallel",),
            vmem_limit_bytes=vmem_limit),
        cost_estimate=pl.CostEstimate(
            flops=flops, transcendentals=0, bytes_accessed=bytes_accessed),
    )(xin, pp["w1"], pp["b1"], pp["w2"], pp["b2"], pp["w3"], pp["b3"])
    return out


def _resident_forward(x2d, pp):
    err = None
    for wbuf in (1, 2):   # try single-buffered resident weights, fall back to default
        try:
            return _resident_call(x2d, pp, wbuf)
        except Exception as e:   # noqa: BLE001 - fallback for unsupported Buffered(1)
            err = e
    raise err


def _stream_forward(x2d, pp):
    B, D = x2d.shape
    tk = pp["tk"]
    Dk = pp["w1"].shape[0]
    nk = Dk // tk
    H1p, H2p, Cp = pp["w1"].shape[1], pp["w2"].shape[1], pp["w3"].shape[1]
    vmem_limit = pp["vmem_limit"]

    resident_bytes = (2 * tk * H1p * 2                       # w1 K-block, double-buffered
                      + ((H1p * H2p + H2p * Cp) * 2 + (H1p + H2p + Cp) * 4) * 2)
    per_row = 10 * tk + 8 * Cp + 4 * H1p + 6 * H1p + 6 * H2p + 512   # x/out dbuf + acc + temps
    budget = max(vmem_limit - resident_bytes - 4 * 1024 * 1024, per_row * 16)
    tb_target = max(16, min(budget // per_row, 4096))
    TB, n_tiles = _choose_tb(B, tb_target)
    Bp = TB * n_tiles
    xin = x2d if Bp == B else jnp.pad(x2d, ((0, Bp - B), (0, 0)))

    flops = 2 * Bp * (Dk * H1p + H1p * H2p + H2p * Cp)
    bytes_accessed = (Bp * D * x2d.dtype.itemsize
                      + (Dk * H1p + H1p * H2p + H2p * Cp) * 2
                      + (H1p + H2p + Cp) * 4 + Bp * Cp * 4)

    kernel = functools.partial(_cls_head_stream_kernel, d_total=D, tk=tk)
    out = pl.pallas_call(
        kernel,
        out_shape=jax.ShapeDtypeStruct((Bp, Cp), jnp.float32),
        grid=(n_tiles, nk),
        in_specs=[
            pl.BlockSpec((TB, tk), lambda i, k: (i, k)),    # x : batch x K tiled
            pl.BlockSpec((tk, H1p), lambda i, k: (k, 0)),   # w1 : streamed over K
            pl.BlockSpec((1, H1p), lambda i, k: (0, 0)),
            pl.BlockSpec((H1p, H2p), lambda i, k: (0, 0)),
            pl.BlockSpec((1, H2p), lambda i, k: (0, 0)),
            pl.BlockSpec((H2p, Cp), lambda i, k: (0, 0)),
            pl.BlockSpec((1, Cp), lambda i, k: (0, 0)),
        ],
        out_specs=pl.BlockSpec((TB, Cp), lambda i, k: (i, 0)),
        scratch_shapes=[pltpu.VMEM((TB, H1p), jnp.float32)],
        compiler_params=pltpu.CompilerParams(
            dimension_semantics=("parallel", "arbitrary"),
            vmem_limit_bytes=vmem_limit),
        cost_estimate=pl.CostEstimate(
            flops=flops, transcendentals=0, bytes_accessed=bytes_accessed),
    )(xin, pp["w1"], pp["b1"], pp["w2"], pp["b2"], pp["w3"], pp["b3"])
    return out


def classification_head(x, prepared):
    """x: [B, ...] (flattens to prepared['D']).  Returns [B, num_classes] f32 logits."""
    B = x.shape[0]
    x2d = x.reshape(B, -1)
    if x2d.shape[1] != prepared["D"]:
        raise ValueError(f"flattened dim {x2d.shape[1]} != prepared D {prepared['D']}")
    if prepared["mode"] == "stream":
        out = _stream_forward(x2d, prepared)
    else:
        out = _resident_forward(x2d, prepared)
    return out[:B, :prepared["C"]]


# --------------------------------------------------------------------------
# Init / reference / demo
# --------------------------------------------------------------------------

def init_params(key, input_dim, num_classes):
    """Deterministic init mimicking nn.Linear default (U[-1/sqrt(fan_in), +])."""
    def linear(k, fan_in, fan_out):
        kw, kb = jax.random.split(k)
        bound = 1.0 / jnp.sqrt(jnp.float32(fan_in))
        w = jax.random.uniform(kw, (fan_in, fan_out), jnp.float32, -bound, bound)
        b = jax.random.uniform(kb, (fan_out,), jnp.float32, -bound, bound)
        return w, b

    k1, k2, k3 = jax.random.split(key, 3)
    w1, b1 = linear(k1, input_dim, H1)
    w2, b2 = linear(k2, H1, H2)
    w3, b3 = linear(k3, H2, num_classes)
    return {"w1": w1, "b1": b1, "w2": w2, "b2": b2, "w3": w3, "b3": b3}


def _reference(x, p):
    """Pure-JAX f32 reference for correctness check."""
    h = x.reshape(x.shape[0], -1) @ p["w1"] + p["b1"]
    h = jnp.where(h > 0, h, LEAKY_SLOPE * h)
    h = h @ p["w2"] + p["b2"]
    h = jnp.where(h > 0, h, LEAKY_SLOPE * h)
    return h @ p["w3"] + p["b3"]


if __name__ == "__main__":
    key = jax.random.PRNGKey(0)
    k_x, k_p = jax.random.split(key)

    # Small shapes consistent with the module: x [B=2, C=4, H=16, W=16]
    # -> input_dim = 4*16*16 = 1024, num_classes = 10 (dropout irrelevant in eval).
    B, C, H, W = 2, 4, 16, 16
    input_dim = C * H * W
    num_classes = 10

    x = jax.random.normal(k_x, (B, C, H, W), dtype=jnp.float32)
    params = init_params(k_p, input_dim, num_classes)
    ref = _reference(x, params)

    # Resident-weights path (default for this flatten dim).
    pp = prepare_params(params)                       # one-off pad/cast of the weights
    out = jax.block_until_ready(classification_head(x, pp))
    assert out.shape == (B, num_classes)
    assert jnp.allclose(out, ref, atol=2e-2, rtol=2e-2), "resident path mismatch"

    # Streamed-K path (exercised explicitly; used automatically for huge flatten dims).
    pp_s = prepare_params(params, force_stream=True)
    out_s = jax.block_until_ready(classification_head(x, pp_s))
    assert out_s.shape == (B, num_classes)
    assert jnp.allclose(out_s, ref, atol=2e-2, rtol=2e-2), "streamed path mismatch"

    print("KERNEL_OK")
</pallas_src>

<mosaic_0001>
module attributes {stable_mosaic.version = 11 : i64} {
  func.func @_cls_head_kernel(%arg0: i32, %arg1: memref<2x1024xf32, #tpu.memory_space<vmem>>, %arg2: memref<1024x256xbf16, #tpu.memory_space<vmem>>, %arg3: memref<1x256xf32, #tpu.memory_space<vmem>>, %arg4: memref<256x128xbf16, #tpu.memory_space<vmem>>, %arg5: memref<1x128xf32, #tpu.memory_space<vmem>>, %arg6: memref<128x128xbf16, #tpu.memory_space<vmem>>, %arg7: memref<1x128xf32, #tpu.memory_space<vmem>>, %arg8: memref<2x128xf32, #tpu.memory_space<vmem>>) attributes {dimension_semantics = [#tpu.dimension_semantics<parallel>], iteration_bounds = array<i64: 1>, scalar_prefetch = 0 : i64, scratch_operands = 0 : i64, tpu.core_type = #tpu.core_type<tc>, window_params = [{transform_indices = @transform_0, window_bounds = array<i64: 2, 1024>}, {pipeline_mode = #tpu.pipeline_mode<synchronous>, transform_indices = @transform_1, window_bounds = array<i64: 1024, 256>}, {pipeline_mode = #tpu.pipeline_mode<synchronous>, transform_indices = @transform_2, window_bounds = array<i64: 1, 256>}, {pipeline_mode = #tpu.pipeline_mode<synchronous>, transform_indices = @transform_3, window_bounds = array<i64: 256, 128>}, {pipeline_mode = #tpu.pipeline_mode<synchronous>, transform_indices = @transform_4, window_bounds = array<i64: 1, 128>}, {pipeline_mode = #tpu.pipeline_mode<synchronous>, transform_indices = @transform_5, window_bounds = array<i64: 128, 128>}, {pipeline_mode = #tpu.pipeline_mode<synchronous>, transform_indices = @transform_6, window_bounds = array<i64: 1, 128>}, {transform_indices = @transform_7, window_bounds = array<i64: 2, 128>}]} {
    %c0 = arith.constant 0 : index
    %c0_0 = arith.constant 0 : index
    %0 = vector.load %arg1[%c0, %c0_0] : memref<2x1024xf32, #tpu.memory_space<vmem>>, vector<2x1024xf32>
    %1 = arith.truncf %0 : vector<2x1024xf32> to vector<2x1024xbf16>
    %c0_1 = arith.constant 0 : index
    %c0_2 = arith.constant 0 : index
    %2 = vector.load %arg2[%c0_1, %c0_2] : memref<1024x256xbf16, #tpu.memory_space<vmem>>, vector<1024x256xbf16>
    %cst = arith.constant dense<0.000000e+00> : vector<2x256xf32>
    %3 = tpu.matmul %1, %2, %cst {dimension_numbers = #tpu.dot_dimension_numbers<[1], [0], [0], [1], [0, 0, 1, 1], [], []>} : vector<2x1024xbf16>, vector<1024x256xbf16>, vector<2x256xf32> -> vector<2x256xf32>
    %c0_3 = arith.constant 0 : index
    %c0_4 = arith.constant 0 : index
    %4 = vector.load %arg3[%c0_3, %c0_4] : memref<1x256xf32, #tpu.memory_space<vmem>>, vector<1x256xf32>
    %5 = vector.broadcast %4 : vector<1x256xf32> to vector<2x256xf32>
    %6 = arith.addf %3, %5 : vector<2x256xf32>
    %cst_5 = arith.constant 0.000000e+00 : f32
    %7 = vector.broadcast %cst_5 : f32 to vector<2x256xf32>
    %8 = arith.cmpf ogt, %6, %7 : vector<2x256xf32>
    %cst_6 = arith.constant 0.00999999977 : f32
    %9 = vector.broadcast %cst_6 : f32 to vector<2x256xf32>
    %10 = arith.mulf %9, %6 : vector<2x256xf32>
    %11 = arith.select %8, %6, %10 : vector<2x256xi1>, vector<2x256xf32>
    %12 = arith.truncf %11 : vector<2x256xf32> to vector<2x256xbf16>
    %c0_7 = arith.constant 0 : index
    %c0_8 = arith.constant 0 : index
    %13 = vector.load %arg4[%c0_7, %c0_8] : memref<256x128xbf16, #tpu.memory_space<vmem>>, vector<256x128xbf16>
    %cst_9 = arith.constant dense<0.000000e+00> : vector<2x128xf32>
    %14 = tpu.matmul %12, %13, %cst_9 {dimension_numbers = #tpu.dot_dimension_numbers<[1], [0], [0], [1], [0, 0, 1, 1], [], []>} : vector<2x256xbf16>, vector<256x128xbf16>, vector<2x128xf32> -> vector<2x128xf32>
    %c0_10 = arith.constant 0 : index
    %c0_11 = arith.constant 0 : index
    %15 = vector.load %arg5[%c0_10, %c0_11] : memref<1x128xf32, #tpu.memory_space<vmem>>, vector<1x128xf32>
    %16 = vector.broadcast %15 : vector<1x128xf32> to vector<2x128xf32>
    %17 = arith.addf %14, %16 : vector<2x128xf32>
    %cst_12 = arith.constant 0.000000e+00 : f32
    %18 = vector.broadcast %cst_12 : f32 to vector<2x128xf32>
    %19 = arith.cmpf ogt, %17, %18 : vector<2x128xf32>
    %cst_13 = arith.constant 0.00999999977 : f32
    %20 = vector.broadcast %cst_13 : f32 to vector<2x128xf32>
    %21 = arith.mulf %20, %17 : vector<2x128xf32>
    %22 = arith.select %19, %17, %21 : vector<2x128xi1>, vector<2x128xf32>
    %23 = arith.truncf %22 : vector<2x128xf32> to vector<2x128xbf16>
    %c0_14 = arith.constant 0 : index
    %c0_15 = arith.constant 0 : index
    %24 = vector.load %arg6[%c0_14, %c0_15] : memref<128x128xbf16, #tpu.memory_space<vmem>>, vector<128x128xbf16>
    %cst_16 = arith.constant dense<0.000000e+00> : vector<2x128xf32>
    %25 = tpu.matmul %23, %24, %cst_16 {dimension_numbers = #tpu.dot_dimension_numbers<[1], [0], [0], [1], [0, 0, 1, 1], [], []>} : vector<2x128xbf16>, vector<128x128xbf16>, vector<2x128xf32> -> vector<2x128xf32>
    %c0_17 = arith.constant 0 : index
    %c0_18 = arith.constant 0 : index
    %26 = vector.load %arg7[%c0_17, %c0_18] : memref<1x128xf32, #tpu.memory_space<vmem>>, vector<1x128xf32>
    %27 = vector.broadcast %26 : vector<1x128xf32> to vector<2x128xf32>
    %28 = arith.addf %25, %27 : vector<2x128xf32>
    %c0_19 = arith.constant 0 : index
    %c0_20 = arith.constant 0 : index
    %29 = vector.load %arg8[%c0_19, %c0_20] : memref<2x128xf32, #tpu.memory_space<vmem>>, vector<2x128xf32>
    tpu.vector_store %arg8[%c0_19, %c0_20], %28 {strides = array<i32>} : memref<2x128xf32, #tpu.memory_space<vmem>>, vector<2x128xf32>,
    return
  }
  func.func @transform_0(%arg0: i32) -> (i32, i32) {
    %c0_i32 = arith.constant 0 : i32
    %c0_i32_0 = arith.constant 0 : i32
    return %arg0, %c0_i32 : i32, i32
  }
  func.func @transform_1(%arg0: i32) -> (i32, i32) {
    %c0_i32 = arith.constant 0 : i32
    %c0_i32_0 = arith.constant 0 : i32
    %c0_i32_1 = arith.constant 0 : i32
    return %c0_i32, %c0_i32_0 : i32, i32
  }
  func.func @transform_2(%arg0: i32) -> (i32, i32) {
    %c0_i32 = arith.constant 0 : i32
    %c0_i32_0 = arith.constant 0 : i32
    %c0_i32_1 = arith.constant 0 : i32
    return %c0_i32, %c0_i32_0 : i32, i32
  }
  func.func @transform_3(%arg0: i32) -> (i32, i32) {
    %c0_i32 = arith.constant 0 : i32
    %c0_i32_0 = arith.constant 0 : i32
    %c0_i32_1 = arith.constant 0 : i32
    return %c0_i32, %c0_i32_0 : i32, i32
  }
  func.func @transform_4(%arg0: i32) -> (i32, i32) {
    %c0_i32 = arith.constant 0 : i32
    %c0_i32_0 = arith.constant 0 : i32
    %c0_i32_1 = arith.constant 0 : i32
    return %c0_i32, %c0_i32_0 : i32, i32
  }
  func.func @transform_5(%arg0: i32) -> (i32, i32) {
    %c0_i32 = arith.constant 0 : i32
    %c0_i32_0 = arith.constant 0 : i32
    %c0_i32_1 = arith.constant 0 : i32
    return %c0_i32, %c0_i32_0 : i32, i32
  }
  func.func @transform_6(%arg0: i32) -> (i32, i32) {
    %c0_i32 = arith.constant 0 : i32
    %c0_i32_0 = arith.constant 0 : i32
    %c0_i32_1 = arith.constant 0 : i32
    return %c0_i32, %c0_i32_0 : i32, i32
  }
  func.func @transform_7(%arg0: i32) -> (i32, i32) {
    %c0_i32 = arith.constant 0 : i32
    %c0_i32_0 = arith.constant 0 : i32
    return %arg0, %c0_i32 : i32, i32
  }
}

module attributes {stable_mosaic.version = 11 : i64} {
  func.func @_cls_head_kernel(%arg0: i32, %arg1: memref<2x1024xf32, #tpu.memory_space<vmem>>, %arg2: memref<1024x256xbf16, #tpu.memory_space<vmem>>, %arg3: memref<1x256xf32, #tpu.memory_space<vmem>>, %arg4: memref<256x128xbf16, #tpu.memory_space<vmem>>, %arg5: memref<1x128xf32, #tpu.memory_space<vmem>>, %arg6: memref<128x128xbf16, #tpu.memory_space<vmem>>, %arg7: memref<1x128xf32, #tpu.memory_space<vmem>>, %arg8: memref<2x128xf32, #tpu.memory_space<vmem>>) attributes {dimension_semantics = [#tpu.dimension_semantics<parallel>], iteration_bounds = array<i64: 1>, scalar_prefetch = 0 : i64, scratch_operands = 0 : i64, tpu.core_type = #tpu.core_type<tc>, window_params = [{transform_indices = @transform_0, window_bounds = array<i64: 2, 1024>}, {pipeline_mode = #tpu.pipeline_mode<synchronous>, transform_indices = @transform_1, window_bounds = array<i64: 1024, 256>}, {pipeline_mode = #tpu.pipeline_mode<synchronous>, transform_indices = @transform_2, window_bounds = array<i64: 1, 256>}, {pipeline_mode = #tpu.pipeline_mode<synchronous>, transform_indices = @transform_3, window_bounds = array<i64: 256, 128>}, {pipeline_mode = #tpu.pipeline_mode<synchronous>, transform_indices = @transform_4, window_bounds = array<i64: 1, 128>}, {pipeline_mode = #tpu.pipeline_mode<synchronous>, transform_indices = @transform_5, window_bounds = array<i64: 128, 128>}, {pipeline_mode = #tpu.pipeline_mode<synchronous>, transform_indices = @transform_6, window_bounds = array<i64: 1, 128>}, {transform_indices = @transform_7, window_bounds = array<i64: 2, 128>}]} {
    %c0 = arith.constant 0 : index
    %c0_0 = arith.constant 0 : index
    %0 = vector.load %arg1[%c0, %c0_0] : memref<2x1024xf32, #tpu.memory_space<vmem>>, vector<2x1024xf32>
    %1 = arith.truncf %0 : vector<2x1024xf32> to vector<2x1024xbf16>
    %c0_1 = arith.constant 0 : index
    %c0_2 = arith.constant 0 : index
    %2 = vector.load %arg2[%c0_1, %c0_2] : memref<1024x256xbf16, #tpu.memory_space<vmem>>, vector<1024x256xbf16>
    %cst = arith.constant dense<0.000000e+00> : vector<2x256xf32>
    %3 = tpu.matmul %1, %2, %cst {dimension_numbers = #tpu.dot_dimension_numbers<[1], [0], [0], [1], [0, 0, 1, 1], [], []>} : vector<2x1024xbf16>, vector<1024x256xbf16>, vector<2x256xf32> -> vector<2x256xf32>
    %c0_3 = arith.constant 0 : index
    %c0_4 = arith.constant 0 : index
    %4 = vector.load %arg3[%c0_3, %c0_4] : memref<1x256xf32, #tpu.memory_space<vmem>>, vector<1x256xf32>
    %5 = vector.broadcast %4 : vector<1x256xf32> to vector<2x256xf32>
    %6 = arith.addf %3, %5 : vector<2x256xf32>
    %cst_5 = arith.constant 0.000000e+00 : f32
    %7 = vector.broadcast %cst_5 : f32 to vector<2x256xf32>
    %8 = arith.cmpf ogt, %6, %7 : vector<2x256xf32>
    %cst_6 = arith.constant 0.00999999977 : f32
    %9 = vector.broadcast %cst_6 : f32 to vector<2x256xf32>
    %10 = arith.mulf %9, %6 : vector<2x256xf32>
    %11 = arith.select %8, %6, %10 : vector<2x256xi1>, vector<2x256xf32>
    %12 = arith.truncf %11 : vector<2x256xf32> to vector<2x256xbf16>
    %c0_7 = arith.constant 0 : index
    %c0_8 = arith.constant 0 : index
    %13 = vector.load %arg4[%c0_7, %c0_8] : memref<256x128xbf16, #tpu.memory_space<vmem>>, vector<256x128xbf16>
    %cst_9 = arith.constant dense<0.000000e+00> : vector<2x128xf32>
    %14 = tpu.matmul %12, %13, %cst_9 {dimension_numbers = #tpu.dot_dimension_numbers<[1], [0], [0], [1], [0, 0, 1, 1], [], []>} : vector<2x256xbf16>, vector<256x128xbf16>, vector<2x128xf32> -> vector<2x128xf32>
    %c0_10 = arith.constant 0 : index
    %c0_11 = arith.constant 0 : index
    %15 = vector.load %arg5[%c0_10, %c0_11] : memref<1x128xf32, #tpu.memory_space<vmem>>, vector<1x128xf32>
    %16 = vector.broadcast %15 : vector<1x128xf32> to vector<2x128xf32>
    %17 = arith.addf %14, %16 : vector<2x128xf32>
    %cst_12 = arith.constant 0.000000e+00 : f32
    %18 = vector.broadcast %cst_12 : f32 to vector<2x128xf32>
    %19 = arith.cmpf ogt, %17, %18 : vector<2x128xf32>
    %cst_13 = arith.constant 0.00999999977 : f32
    %20 = vector.broadcast %cst_13 : f32 to vector<2x128xf32>
    %21 = arith.mulf %20, %17 : vector<2x128xf32>
    %22 = arith.select %19, %17, %21 : vector<2x128xi1>, vector<2x128xf32>
    %23 = arith.truncf %22 : vector<2x128xf32> to vector<2x128xbf16>
    %c0_14 = arith.constant 0 : index
    %c0_15 = arith.constant 0 : index
    %24 = vector.load %arg6[%c0_14, %c0_15] : memref<128x128xbf16, #tpu.memory_space<vmem>>, vector<128x128xbf16>
    %cst_16 = arith.constant dense<0.000000e+00> : vector<2x128xf32>
    %25 = tpu.matmul %23, %24, %cst_16 {dimension_numbers = #tpu.dot_dimension_numbers<[1], [0], [0], [1], [0, 0, 1, 1], [], []>} : vector<2x128xbf16>, vector<128x128xbf16>, vector<2x128xf32> -> vector<2x128xf32>
    %c0_17 = arith.constant 0 : index
    %c0_18 = arith.constant 0 : index
    %26 = vector.load %arg7[%c0_17, %c0_18] : memref<1x128xf32, #tpu.memory_space<vmem>>, vector<1x128xf32>
    %27 = vector.broadcast %26 : vector<1x128xf32> to vector<2x128xf32>
    %28 = arith.addf %25, %27 : vector<2x128xf32>
    %c0_19 = arith.constant 0 : index
    %c0_20 = arith.constant 0 : index
    %29 = vector.load %arg8[%c0_19, %c0_20] : memref<2x128xf32, #tpu.memory_space<vmem>>, vector<2x128xf32>
    tpu.vector_store %arg8[%c0_19, %c0_20], %28 {strides = array<i32>} : memref<2x128xf32, #tpu.memory_space<vmem>>, vector<2x128xf32>,
    return
  }
  func.func @transform_0(%arg0: i32) -> (i32, i32) {
    %c0_i32 = arith.constant 0 : i32
    %c0_i32_0 = arith.constant 0 : i32
    return %arg0, %c0_i32 : i32, i32
  }
  func.func @transform_1(%arg0: i32) -> (i32, i32) {
    %c0_i32 = arith.constant 0 : i32
    %c0_i32_0 = arith.constant 0 : i32
    %c0_i32_1 = arith.constant 0 : i32
    return %c0_i32, %c0_i32_0 : i32, i32
  }
  func.func @transform_2(%arg0: i32) -> (i32, i32) {
    %c0_i32 = arith.constant 0 : i32
    %c0_i32_0 = arith.constant 0 : i32
    %c0_i32_1 = arith.constant 0 : i32
    return %c0_i32, %c0_i32_0 : i32, i32
  }
  func.func @transform_3(%arg0: i32) -> (i32, i32) {
    %c0_i32 = arith.constant 0 : i32
    %c0_i32_0 = arith.constant 0 : i32
    %c0_i32_1 = arith.constant 0 : i32
    return %c0_i32, %c0_i32_0 : i32, i32
  }
  func.func @transform_4(%arg0: i32) -> (i32, i32) {
    %c0_i32 = arith.constant 0 : i32
    %c0_i32_0 = arith.constant 0 : i32
    %c0_i32_1 = arith.constant 0 : i32
    return %c0_i32, %c0_i32_0 : i32, i32
  }
  func.func @transform_5(%arg0: i32) -> (i32, i32) {
    %c0_i32 = arith.constant 0 : i32
    %c0_i32_0 = arith.constant 0 : i32
    %c0_i32_1 = arith.constant 0 : i32
    return %c0_i32, %c0_i32_0 : i32, i32
  }
  func.func @transform_6(%arg0: i32) -> (i32, i32) {
    %c0_i32 = arith.constant 0 : i32
    %c0_i32_0 = arith.constant 0 : i32
    %c0_i32_1 = arith.constant 0 : i32
    return %c0_i32, %c0_i32_0 : i32, i32
  }
  func.func @transform_7(%arg0: i32) -> (i32, i32) {
    %c0_i32 = arith.constant 0 : i32
    %c0_i32_0 = arith.constant 0 : i32
    return %arg0, %c0_i32 : i32, i32
  }
}

</mosaic_0001>

<bundles_post_ra>
// kernel: tpu_custom_call.1
= control target key start
LH: loop header
LB: loop body
LE: loop exit
PB: predicated region body
PF: predicated region fallthrough
CT: control target
= control target key end

     0   :  { %12 = vsyncpa [#allocation3], 0  ;;  %s2046_s0 = inlined_call_operand.hbm [shape: f32[2,1024], index: 0, kind: input, shape index: {}]   ;;  %s2047_s1 = inlined_call_operand.hbm [shape: bf16[1024,256], index: 1, kind: input, shape index: {}]   ;;  %s2048_s2 = inlined_call_operand.vmem [shape: f32[1,256], index: 2, kind: input, shape index: {}]   ;;  %s2049_s3 = inlined_call_operand.hbm [shape: bf16[256,128], index: 3, kind: input, shape index: {}]   ;;  %s2050_s4 = inlined_call_operand.vmem [shape: f32[1,128], index: 4, kind: input, shape index: {}]   ;;  %s2051_s5 = inlined_call_operand.hbm [shape: bf16[128,128], index: 5, kind: input, shape index: {}]   ;;  %s2052_s6 = inlined_call_operand.vmem [shape: f32[1,128], index: 6, kind: input, shape index: {}]   ;;  %s2053_s7 = inlined_call_operand.hbm [shape: f32[2,128], index: 7, kind: output, shape index: {}]  }
   0x1   :  { %13 = vsyncpa [#allocation6], 0 }
   0x2   :  { %14 = vsyncpa [#allocation9], 0 }
   0x3   :  { %15 = vsyncpa [#allocation4], 0  ;;  %s1938_s24 = smov [#allocation5]  }
   0x4   :  { %s31_s25 = sshll.u32 %s1938_s24, 4  ;;  %s32_s25 = int_to_ptr.vmem [resolvable:$true] %s31_s25 }
   0x5   :  { %s1838_s26 = scalar_lea.vmem %s32_s25, 16384  ;;  %p1843_p1 = scmp.lt.s32.totalorder %s32_s25, %s32_s25 }
   0x6   :  { %p1839_p0 = scmp.ne.s32.totalorder %s32_s25, %s1838_s26  ;;  %p1844_p2 = scmp.lt.s32.totalorder %s1838_s26, %s1838_s26 }
   0x8   :  { %p1845_p3 = por %p1844_p2, %p1843_p1 }
   0xa   :  { %p1846_p4 = pnand %p1845_p3, %p1839_p0 }
   0xc   :  { %1849 = shalt.err (!%p1846_p4)
}
   0xd   :  { %s1939_s27 = smov 128   ;;  %s1940_s28 = smov 8  }
   0xe   :  { %37 = dma.hbm_to_vmem [thread:$0]  %s2047_s1, 16384, %s32_s25, [#allocation6], %s1939_s27, %s1939_s27, %s1940_s28  }
   0xf   :  { %s1941_s8 = smov [#allocation2]   ;;  %s1942_s10 = smov [#allocation7]  }
  0x10   :  { %s22_s9 = sshll.u32 %s1941_s8, 4  ;;  %s45_s11 = sshll.u32 %s1942_s10, 4  ;;  %s23_s9 = int_to_ptr.vmem [resolvable:$true] %s22_s9  ;;  %s46_s11 = int_to_ptr.vmem [resolvable:$true] %s45_s11 }
  0x11   :  { %s1858_s12 = scalar_lea.vmem %s23_s9, 256  ;;  %p1863_p6 = scmp.lt.s32.totalorder %s23_s9, %s23_s9 }
  0x12   :  { %p1859_p5 = scmp.ne.s32.totalorder %s23_s9, %s1858_s12  ;;  %p1864_p7 = scmp.lt.s32.totalorder %s1858_s12, %s1858_s12 }
  0x14   :  { %p1865_p8 = por %p1864_p7, %p1863_p6 }
  0x16   :  { %p1866_p9 = pnand %p1865_p8, %p1859_p5 }
  0x18   :  { %1869 = shalt.err (!%p1866_p9)
}
  0x19   :  { %25 = dma.hbm_to_vmem [thread:$0]  %s2046_s0, 256, %s23_s9, [#allocation3]  }
  0x1a   :  { %s1878_s15 = scalar_lea.vmem %s46_s11, 2048  ;;  %p1883_p11 = scmp.lt.s32.totalorder %s46_s11, %s46_s11 }
  0x1b   :  { %p1879_p10 = scmp.ne.s32.totalorder %s46_s11, %s1878_s15  ;;  %p1884_p12 = scmp.lt.s32.totalorder %s1878_s15, %s1878_s15 }
  0x1d   :  { %p1885_p13 = por %p1884_p12, %p1883_p11 }
  0x1f   :  { %p1886_p0 = pnand %p1885_p13, %p1879_p10 }
  0x21   :  { %1889 = shalt.err (!%p1886_p0)
}
  0x22   :  { %s1943_s1 = smov 64   ;;  %s1944_s16 = smov 4  }
  0x23   :  { %51 = dma.hbm_to_vmem [thread:$0]  %s2049_s3, 2048, %s46_s11, [#allocation6], %s1943_s1, %s1943_s1, %s1944_s16  }
  0x24   :  { %s1945_s19 = smov [#allocation8]  }
  0x25   :  { %s59_s20 = sshll.u32 %s1945_s19, 4  ;;  %s60_s20 = int_to_ptr.vmem [resolvable:$true] %s59_s20 }
  0x26   :  { %s1898_s21 = scalar_lea.vmem %s60_s20, 1024  ;;  %p1903_p2 = scmp.lt.s32.totalorder %s60_s20, %s60_s20 }
  0x27   :  { %p1899_p1 = scmp.ne.s32.totalorder %s60_s20, %s1898_s21  ;;  %p1904_p3 = scmp.lt.s32.totalorder %s1898_s21, %s1898_s21 }
  0x29   :  { %p1905_p4 = por %p1904_p3, %p1903_p2 }
  0x2b   :  { %p1906_p5 = pnand %p1905_p4, %p1899_p1 }
  0x2d   :  { %1909 = shalt.err (!%p1906_p5)
}
  0x2e   :  { %65 = dma.hbm_to_vmem [thread:$0]  %s2051_s5, 1024, %s60_s20, [#allocation9], %s1943_s1, %s1943_s1, %s1944_s16  }
  0x2f   :  { %1930 = dma.done.wait [#allocation3], 256  }
  0x30   :  { %1931 = vsyncadd [#allocation3], 4294967040 }
  0x31   :  { %1932 = dma.done.wait [#allocation6], 18432  }
  0x32   :  { %1933 = vsyncadd [#allocation6], 4294948864 }
  0x33   :  { %1934 = dma.done.wait [#allocation9], 1024  }
  0x34   :  { %1935 = vsyncadd [#allocation9], 4294966272  ;;  %v1612_v0 = vld [vmem:[#allocation5 + $0x74] ss:$8 sps:$4 sm:$0xff]   ;;  %v1616_v2 = vld [vmem:[#allocation5 + $0x70] ss:$8 sps:$4 sm:$0xff]   ;;  %v89_v38 = vlaneseq }
  0x35   :  { %v1614_v1 = vld [vmem:[#allocation5 + $0x174] ss:$8 sps:$4 sm:$0xff]   ;;  %915 = vmatprep.subr.bf16.mxu0 %v1612_v0  ;;  %v1617_v3 = vld [vmem:[#allocation5 + $0x170] ss:$8 sps:$4 sm:$0xff]   ;;  %v1618_v4 = vld [vmem:[#allocation5 + $0x64] ss:$8 sps:$4 sm:$0xff]  }
  0x36   :  { %956 = vmatprep.subr.bf16.mxu1 %v1614_v1  ;;  %916 = vmatpush1.bf16.msra.mxu0 %v1616_v2  ;;  %v1620_v5 = vld [vmem:[#allocation5 + $0x164] ss:$8 sps:$4 sm:$0xff]   ;;  %v1622_v6 = vld [vmem:[#allocation5 + $0x60] ss:$8 sps:$4 sm:$0xff]   ;;  %v1624_v8 = vld [vmem:[#allocation5 + $0x54] ss:$8 sps:$4 sm:$0xff]  }
  0x37   :  { %957 = vmatpush1.bf16.msra.mxu1 %v1617_v3  ;;  %917 = vmatprep.subr.bf16.mxu0 %v1618_v4  ;;  %v1623_v7 = vld [vmem:[#allocation5 + $0x160] ss:$8 sps:$4 sm:$0xff]   ;;  %v1626_v9 = vld [vmem:[#allocation5 + $0x154] ss:$8 sps:$4 sm:$0xff]   ;;  %v1628_v10 = vld [vmem:[#allocation5 + $0x50] ss:$8 sps:$4 sm:$0xff]  }
  0x38   :  { %958 = vmatprep.subr.bf16.mxu1 %v1620_v5  ;;  %v1629_v11 = vld [vmem:[#allocation5 + $0x150] ss:$8 sps:$4 sm:$0xff]   ;;  %v1630_v12 = vld [vmem:[#allocation5 + $0x44] ss:$8 sps:$4 sm:$0xff]   ;;  %v1634_v14 = vld [vmem:[#allocation5 + $0x40] ss:$8 sps:$4 sm:$0xff]  }
  0x39   :  { %v1632_v13 = vld [vmem:[#allocation5 + $0x144] ss:$8 sps:$4 sm:$0xff]   ;;  %v1635_v15 = vld [vmem:[#allocation5 + $0x140] ss:$8 sps:$4 sm:$0xff]   ;;  %v1636_v16 = vld [vmem:[#allocation5 + $0x34] ss:$8 sps:$4 sm:$0xff]  }
  0x3a   :  { %918 = vmatpush1.bf16.msra.mxu0 %v1622_v6  ;;  %v1638_v17 = vld [vmem:[#allocation5 + $0x134] ss:$8 sps:$4 sm:$0xff]   ;;  %v1640_v18 = vld [vmem:[#allocation5 + $0x30] ss:$8 sps:$4 sm:$0xff]   ;;  %v1642_v20 = vld [vmem:[#allocation5 + $0x24] ss:$8 sps:$4 sm:$0xff]  }
  0x3b   :  { %959 = vmatpush1.bf16.msra.mxu1 %v1623_v7  ;;  %919 = vmatprep.subr.bf16.mxu0 %v1624_v8  ;;  %v1641_v19 = vld [vmem:[#allocation5 + $0x130] ss:$8 sps:$4 sm:$0xff]   ;;  %v1644_v21 = vld [vmem:[#allocation5 + $0x124] ss:$8 sps:$4 sm:$0xff]   ;;  %v1646_v22 = vld [vmem:[#allocation5 + $0x20] ss:$8 sps:$4 sm:$0xff]  }
  0x3c   :  { %960 = vmatprep.subr.bf16.mxu1 %v1626_v9  ;;  %v1647_v23 = vld [vmem:[#allocation5 + $0x120] ss:$8 sps:$4 sm:$0xff]   ;;  %v1648_v24 = vld [vmem:[#allocation5 + $0x14] ss:$8 sps:$4 sm:$0xff]   ;;  %v1652_v26 = vld [vmem:[#allocation5 + $0x10] ss:$8 sps:$4 sm:$0xff]  }
  0x3d   :  { %v1650_v25 = vld [vmem:[#allocation5 + $0x114] ss:$8 sps:$4 sm:$0xff]   ;;  %v1653_v27 = vld [vmem:[#allocation5 + $0x110] ss:$8 sps:$4 sm:$0xff]   ;;  %v1654_v28 = vld [vmem:[#allocation5 + $0x4] ss:$8 sps:$4 sm:$0xff]  }
  0x3e   :  { %920 = vmatpush1.bf16.msra.mxu0 %v1628_v10  ;;  %v1656_v29 = vld [vmem:[#allocation5 + $0x104] ss:$8 sps:$4 sm:$0xff]   ;;  %v1658_v30 = vld [vmem:[#allocation5] ss:$8 sps:$4 sm:$0xff]   ;;  %v1660_v32 = vld [vmem:[#allocation5 + $0xf4] ss:$8 sps:$4 sm:$0xff]  }
  0x3f   :  { %961 = vmatpush1.bf16.msra.mxu1 %v1629_v11  ;;  %921 = vmatprep.subr.bf16.mxu0 %v1630_v12  ;;  %v1659_v31 = vld [vmem:[#allocation5 + $0x100] ss:$8 sps:$4 sm:$0xff]   ;;  %v1662_v33 = vld [vmem:[#allocation5 + $0x1f4] ss:$8 sps:$4 sm:$0xff]   ;;  %v1664_v34 = vld [vmem:[#allocation5 + $0xf0] ss:$8 sps:$4 sm:$0xff]  }
  0x40   :  { %962 = vmatprep.subr.bf16.mxu1 %v1632_v13  ;;  %v1665_v35 = vld [vmem:[#allocation5 + $0x1f0] ss:$8 sps:$4 sm:$0xff]   ;;  %v1946_v36 = vmov 1983009808   ;;  %v1666_v39 = vld [vmem:[#allocation5 + $0xe4] ss:$8 sps:$4 sm:$0xff]  }
  0x41   :  { %v87_v37 = vunpack.c.l.s4 %v1946_v36  ;;  %v1668_v40 = vld [vmem:[#allocation5 + $0x1e4] ss:$8 sps:$4 sm:$0xff]   ;;  %v1670_v41 = vld [vmem:[#allocation5 + $0xe0] ss:$8 sps:$4 sm:$0xff]   ;;  %v2002_v43 = vshrl.u32 %v89_v38, 7  ;;  %v81_v52 = vld [vmem:[#allocation2] sm:$0xff] }
  0x42   :  { %922 = vmatpush1.bf16.msra.mxu0 %v1634_v14  ;;  %v1671_v44 = vld [vmem:[#allocation5 + $0x1e0] ss:$8 sps:$4 sm:$0xff]   ;;  %v1672_v45 = vld [vmem:[#allocation5 + $0xd4] ss:$8 sps:$4 sm:$0xff]   ;;  %v1676_v47 = vld [vmem:[#allocation5 + $0xd0] ss:$8 sps:$4 sm:$0xff]   ;;  %v85_v55 = vcombine.high %v81_v52, %v81_v52 }
  0x43   :  { %963 = vmatpush1.bf16.msra.mxu1 %v1635_v15  ;;  %923 = vmatprep.subr.bf16.mxu0 %v1636_v16  ;;  %v88_v42 = vunpack.c.0.s8 %v87_v37  ;;  %v1674_v46 = vld [vmem:[#allocation5 + $0x1d4] ss:$8 sps:$4 sm:$0xff]   ;;  %v1677_v48 = vld [vmem:[#allocation5 + $0x1d0] ss:$8 sps:$4 sm:$0xff]   ;;  %v1678_v50 = vld [vmem:[#allocation5 + $0xc4] ss:$8 sps:$4 sm:$0xff]  }
  0x44   :  { %964 = vmatprep.subr.bf16.mxu1 %v1638_v17  ;;  %v1680_v51 = vld [vmem:[#allocation5 + $0x1c4] ss:$8 sps:$4 sm:$0xff]   ;;  %v1682_v53 = vld [vmem:[#allocation5 + $0xc0] ss:$8 sps:$4 sm:$0xff]   ;;  %v1684_v57 = vld [vmem:[#allocation5 + $0xb4] ss:$8 sps:$4 sm:$0xff]  }
  0x45   :  { %v2005_v49 = vsub.s32 %v88_v42, %v2002_v43  ;;  %v1683_v56 = vld [vmem:[#allocation5 + $0x1c0] ss:$8 sps:$4 sm:$0xff]   ;;  %v1686_v58 = vld [vmem:[#allocation5 + $0x1b4] ss:$8 sps:$4 sm:$0xff]   ;;  %v1688_v61 = vld [vmem:[#allocation5 + $0xb0] ss:$8 sps:$4 sm:$0xff]  }
  0x46   :  { %924 = vmatpush1.bf16.msra.mxu0 %v1640_v18  ;;  %v1689_v0 = vld [vmem:[#allocation5 + $0x1b0] ss:$8 sps:$4 sm:$0xff]   ;;  %v1690_v1 = vld [vmem:[#allocation5 + $0xa4] ss:$8 sps:$4 sm:$0xff]   ;;  %v1694_v4 = vld [vmem:[#allocation5 + $0xa0] ss:$8 sps:$4 sm:$0xff]  }
  0x47   :  { %965 = vmatpush1.bf16.msra.mxu1 %v1641_v19  ;;  %925 = vmatprep.subr.bf16.mxu0 %v1642_v20  ;;  %v92_v54 = vrot.slane %v81_v52, %v2005_v49  ;;  %v99_v60 = vrot.slane %v85_v55, %v2005_v49  ;;  %v1692_v2 = vld [vmem:[#allocation5 + $0x1a4] ss:$8 sps:$4 sm:$0xff]   ;;  %v1695_v5 = vld [vmem:[#allocation5 + $0x1a0] ss:$8 sps:$4 sm:$0xff]   ;;  %v1696_v6 = vld [vmem:[#allocation5 + $0x94] ss:$8 sps:$4 sm:$0xff]  }
  0x48   :  { %966 = vmatprep.subr.bf16.mxu1 %v1644_v21  ;;  %v1698_v7 = vld [vmem:[#allocation5 + $0x194] ss:$8 sps:$4 sm:$0xff]   ;;  %v1700_v8 = vld [vmem:[#allocation5 + $0x90] ss:$8 sps:$4 sm:$0xff]   ;;  %v1702_v10 = vld [vmem:[#allocation5 + $0x84] ss:$8 sps:$4 sm:$0xff]  }
  0x49   :  { %v100_v59 = vcombine.high %v92_v54, %v92_v54  ;;  %v101_v63 = vcombine.high %v99_v60, %v99_v60  ;;  %v1701_v9 = vld [vmem:[#allocation5 + $0x190] ss:$8 sps:$4 sm:$0xff]   ;;  %v1704_v11 = vld [vmem:[#allocation5 + $0x184] ss:$8 sps:$4 sm:$0xff]   ;;  %v1706_v12 = vld [vmem:[#allocation5 + $0x80] ss:$8 sps:$4 sm:$0xff]   ;;  %v127_v16 = vpack.c.bf16 %v92_v54, %v92_v54  ;;  %v129_v17 = vpack.c.bf16 %v99_v60, %v99_v60 }
  0x4a   :  { %926 = vmatpush1.bf16.msra.mxu0 %v1646_v22  ;;  %v1707_v13 = vld [vmem:[#allocation5 + $0x180] ss:$8 sps:$4 sm:$0xff]   ;;  %v1711_v14 = vld [vmem:[#allocation5 + $0x274] ss:$8 sps:$4 sm:$0xff]   ;;  %v1709_v18 = vld [vmem:[#allocation5 + $0x270] ss:$8 sps:$4 sm:$0xff]  }
  0x4b   :  { %967 = vmatpush1.bf16.msra.mxu1 %v1647_v23  ;;  %927 = vmatprep.subr.bf16.mxu0 %v1648_v24  ;;  %v128_v62 = vpack.c.bf16 %v100_v59, %v100_v59  ;;  %v130_v3 = vpack.c.bf16 %v101_v63, %v101_v63  ;;  %v1714_v15 = vld [vmem:[#allocation5 + $0x374] ss:$8 sps:$4 sm:$0xff]   ;;  %v1712_v19 = vld [vmem:[#allocation5 + $0x370] ss:$8 sps:$4 sm:$0xff]   ;;  %v1717_v20 = vld [vmem:[#allocation5 + $0x264] ss:$8 sps:$4 sm:$0xff]  }
  0x4c   :  { %968 = vmatprep.subr.bf16.mxu1 %v1650_v25  ;;  %v1720_v21 = vld [vmem:[#allocation5 + $0x364] ss:$8 sps:$4 sm:$0xff]   ;;  %v1715_v22 = vld [vmem:[#allocation5 + $0x260] ss:$8 sps:$4 sm:$0xff]   ;;  %v1723_v24 = vld [vmem:[#allocation5 + $0x254] ss:$8 sps:$4 sm:$0xff]  }
  0x4d   :  { %947 = vmatprep.mubr.bf16.mxu0 %v128_v62  ;;  %988 = vmatprep.mubr.bf16.mxu1 %v130_v3  ;;  %v1718_v23 = vld [vmem:[#allocation5 + $0x360] ss:$8 sps:$4 sm:$0xff]   ;;  %v1726_v25 = vld [vmem:[#allocation5 + $0x354] ss:$8 sps:$4 sm:$0xff]   ;;  %v1741_v36 = vld [vmem:[#allocation5 + $0x224] ss:$8 sps:$4 sm:$0xff]  }
  0x4e   :  { %928 = vmatpush1.bf16.msra.mxu0 %v1652_v26  ;;  %v1721_v26 = vld [vmem:[#allocation5 + $0x250] ss:$8 sps:$4 sm:$0xff]   ;;  %v1744_v37 = vld [vmem:[#allocation5 + $0x324] ss:$8 sps:$4 sm:$0xff]   ;;  %v1739_v38 = vld [vmem:[#allocation5 + $0x220] ss:$8 sps:$4 sm:$0xff]  }
  0x4f   :  { %969 = vmatpush1.bf16.msra.mxu1 %v1653_v27  ;;  %929 = vmatprep.subr.bf16.mxu0 %v1654_v28  ;;  %v1724_v27 = vld [vmem:[#allocation5 + $0x350] ss:$8 sps:$4 sm:$0xff]   ;;  %v1729_v28 = vld [vmem:[#allocation5 + $0x244] ss:$8 sps:$4 sm:$0xff]   ;;  %v1754_v54 = vld [vmem:[#allocation5 + $0x300] ss:$8 sps:$4 sm:$0xff]  }
  0x50   :  { %970 = vmatprep.subr.bf16.mxu1 %v1656_v29  ;;  %v1732_v29 = vld [vmem:[#allocation5 + $0x344] ss:$8 sps:$4 sm:$0xff]   ;;  %v82_v42 = vld [vmem:[#allocation2 + $0x8] sm:$0xff]  ;;  %v1763_v63 = vld [vmem:[#allocation5 + $0x2e0] ss:$8 sps:$4 sm:$0xff]   ;;  %vm1948_vm2 = vmmov 0  }
  0x51   :  { %v1757_v60 = vld [vmem:[#allocation5 + $0x2f0] ss:$8 sps:$4 sm:$0xff]   ;;  %v1768_v62 = vld [vmem:[#allocation5 + $0x3e4] ss:$8 sps:$4 sm:$0xff]   ;;  %s1949_s26 = smov [#allocation10]  }
  0x52   :  { %930 = vmatpush1.bf16.msra.mxu0 %v1658_v30  ;;  %v1727_v30 = vld [vmem:[#allocation5 + $0x240] ss:$8 sps:$4 sm:$0xff]   ;;  %v1769_v3 = vld [vmem:[#allocation5 + $0x2d0] ss:$8 sps:$4 sm:$0xff]   ;;  %s1384_s27 = sshll.u32 %s1949_s26, 4  ;;  %s1385_s27 = int_to_ptr.vmem [resolvable:$true] %s1384_s27 }
  0x53   :  { %971 = vmatpush1.bf16.msra.mxu1 %v1659_v31  ;;  %931 = vmatprep.subr.bf16.mxu0 %v1660_v32  ;;  %v1730_v31 = vld [vmem:[#allocation5 + $0x340] ss:$8 sps:$4 sm:$0xff]   ;;  %v1735_v32 = vld [vmem:[#allocation5 + $0x234] ss:$8 sps:$4 sm:$0xff]   ;;  %p1915_p7 = scmp.lt.s32.totalorder %s1385_s27, %s1385_s27 }
  0x54   :  { %972 = vmatprep.subr.bf16.mxu1 %v1662_v33  ;;  %v1738_v33 = vld [vmem:[#allocation5 + $0x334] ss:$8 sps:$4 sm:$0xff]  }
  0x56   :  { %932 = vmatpush2.bf16.msra.mxu0 %v1664_v34  ;;  %v1733_v34 = vld [vmem:[#allocation5 + $0x230] ss:$8 sps:$4 sm:$0xff]  }
  0x57   :  { %973 = vmatpush2.bf16.msra.mxu1 %v1665_v35  ;;  %933 = vmatprep.subr.bf16.mxu0 %v1666_v39  ;;  %v1736_v35 = vld [vmem:[#allocation5 + $0x330] ss:$8 sps:$4 sm:$0xff]   ;;  %v1742_v39 = vld [vmem:[#allocation5 + $0x320] ss:$8 sps:$4 sm:$0xff]  }
  0x58   :  { %974 = vmatprep.subr.bf16.mxu1 %v1668_v40  ;;  %v1747_v40 = vld [vmem:[#allocation5 + $0x214] ss:$8 sps:$4 sm:$0xff]  }
  0x5a   :  { %934 = vmatpush2.bf16.msra.mxu0 %v1670_v41  ;;  %v1750_v41 = vld [vmem:[#allocation5 + $0x314] ss:$8 sps:$4 sm:$0xff]  }
  0x5b   :  { %975 = vmatpush2.bf16.msra.mxu1 %v1671_v44  ;;  %935 = vmatprep.subr.bf16.mxu0 %v1672_v45  ;;  %v1745_v44 = vld [vmem:[#allocation5 + $0x210] ss:$8 sps:$4 sm:$0xff]  }
  0x5c   :  { %976 = vmatprep.subr.bf16.mxu1 %v1674_v46  ;;  %v1748_v45 = vld [vmem:[#allocation5 + $0x310] ss:$8 sps:$4 sm:$0xff]   ;;  %v2010_v46 = vrot.slane %v82_v42, %v2005_v49 }
  0x5e   :  { %936 = vmatpush2.bf16.msra.mxu0 %v1676_v47  ;;  %v102_v47 = vcombine.high %v82_v42, %v82_v42  ;;  %v1821_v42 = vld [vmem:[#allocation7] sm:$0xff]  }
  0x5f   :  { %977 = vmatpush2.bf16.msra.mxu1 %v1677_v48  ;;  %937 = vmatprep.subr.bf16.mxu0 %v1678_v50  ;;  %v1753_v48 = vld [vmem:[#allocation5 + $0x204] ss:$8 sps:$4 sm:$0xff]  }
  0x60   :  { %978 = vmatprep.subr.bf16.mxu1 %v1680_v51  ;;  %v1756_v50 = vld [vmem:[#allocation5 + $0x304] ss:$8 sps:$4 sm:$0xff]   ;;  %v117_v51 = vcombine.high %v2010_v46, %v2010_v46  ;;  %v2015_v52 = vrot.slane %v102_v47, %v2005_v49 }
  0x61   :  { %v1765_v49 = vld [vmem:[#allocation5 + $0x2e4] ss:$8 sps:$4 sm:$0xff]  }
  0x62   :  { %938 = vmatpush2.bf16.msra.mxu0 %v1682_v53  ;;  %v1751_v53 = vld [vmem:[#allocation5 + $0x200] ss:$8 sps:$4 sm:$0xff]   ;;  %v132_v55 = vpack.c.bf16 %v117_v51, %v117_v51 }
  0x63   :  { %979 = vmatpush2.bf16.msra.mxu1 %v1683_v56  ;;  %939 = vmatprep.subr.bf16.mxu0 %v1684_v57  ;;  %v118_v56 = vcombine.high %v2015_v52, %v2015_v52  ;;  %v1759_v57 = vld [vmem:[#allocation5 + $0x2f4] ss:$8 sps:$4 sm:$0xff]   ;;  %v1824_v47 = vld [vmem:[#allocation8 + $0x28] sm:$0xff]  }
  0x64   :  { %980 = vmatprep.subr.bf16.mxu1 %v1686_v58  ;;  %v1762_v58 = vld [vmem:[#allocation5 + $0x3f4] ss:$8 sps:$4 sm:$0xff]  }
  0x65   :  { %v134_v59 = vpack.c.bf16 %v118_v56, %v118_v56 }
  0x66   :  { %940 = vmatpush2.bf16.msra.mxu0 %v1688_v61  ;;  %v1760_v61 = vld [vmem:[#allocation5 + $0x3f0] ss:$8 sps:$4 sm:$0xff]  }
  0x67   :  { %981 = vmatpush2.bf16.msra.mxu1 %v1689_v0  ;;  %941 = vmatprep.subr.bf16.mxu0 %v1690_v1  ;;  %v1766_v0 = vld [vmem:[#allocation5 + $0x3e0] ss:$8 sps:$4 sm:$0xff]   ;;  %v1771_v1 = vld [vmem:[#allocation5 + $0x2d4] ss:$8 sps:$4 sm:$0xff]  }
  0x68   :  { %982 = vmatprep.subr.bf16.mxu1 %v1692_v2  ;;  %v1774_v2 = vld [vmem:[#allocation5 + $0x3d4] ss:$8 sps:$4 sm:$0xff]  }
  0x6a   :  { %942 = vmatpush2.bf16.msra.mxu0 %v1694_v4  ;;  %v1772_v4 = vld [vmem:[#allocation5 + $0x3d0] ss:$8 sps:$4 sm:$0xff]  }
  0x6b   :  { %983 = vmatpush2.bf16.msra.mxu1 %v1695_v5  ;;  %943 = vmatprep.subr.bf16.mxu0 %v1696_v6  ;;  %v1777_v5 = vld [vmem:[#allocation5 + $0x2c4] ss:$8 sps:$4 sm:$0xff]  }
  0x6c   :  { %984 = vmatprep.subr.bf16.mxu1 %v1698_v7  ;;  %v1780_v6 = vld [vmem:[#allocation5 + $0x3c4] ss:$8 sps:$4 sm:$0xff]   ;;  %v1775_v7 = vld [vmem:[#allocation5 + $0x2c0] ss:$8 sps:$4 sm:$0xff]  }
  0x6e   :  { %944 = vmatpush2.bf16.msra.mxu0 %v1700_v8  ;;  %v1778_v8 = vld [vmem:[#allocation5 + $0x3c0] ss:$8 sps:$4 sm:$0xff]  }
  0x6f   :  { %985 = vmatpush2.bf16.msra.mxu1 %v1701_v9  ;;  %945 = vmatprep.subr.bf16.mxu0 %v1702_v10  ;;  %v1783_v9 = vld [vmem:[#allocation5 + $0x2b4] ss:$8 sps:$4 sm:$0xff]  }
  0x70   :  { %986 = vmatprep.subr.bf16.mxu1 %v1704_v11  ;;  %v1786_v10 = vld [vmem:[#allocation5 + $0x3b4] ss:$8 sps:$4 sm:$0xff]   ;;  %v1781_v11 = vld [vmem:[#allocation5 + $0x2b0] ss:$8 sps:$4 sm:$0xff]  }
  0x72   :  { %946 = vmatpush2.bf16.msra.mxu0 %v1706_v12  ;;  %v1784_v12 = vld [vmem:[#allocation5 + $0x3b0] ss:$8 sps:$4 sm:$0xff]  }
  0x73   :  { %987 = vmatpush2.bf16.msra.mxu1 %v1707_v13  ;;  %997 = vmatprep.subr.bf16.mxu0 %v1711_v14  ;;  %v1789_v13 = vld [vmem:[#allocation5 + $0x2a4] ss:$8 sps:$4 sm:$0xff]  }
  0x74   :  { %1038 = vmatprep.subr.bf16.mxu1 %v1714_v15  ;;  %v1792_v14 = vld [vmem:[#allocation5 + $0x3a4] ss:$8 sps:$4 sm:$0xff]   ;;  %v1787_v15 = vld [vmem:[#allocation5 + $0x2a0] ss:$8 sps:$4 sm:$0xff]  }
  0x75   :  { %948 = vmatmul.mubr.bf16.vlgmr.msra.gmra.mxu0 %v127_v16  ;;  %v1790_v16 = vld [vmem:[#allocation5 + $0x3a0] ss:$8 sps:$4 sm:$0xff]  }
  0x76   :  { %989 = vmatmul.mubr.bf16.vlgmr.msra.gmra.mxu1 %v129_v17  ;;  %998 = vmatpush1.bf16.msra.mxu0 %v1709_v18  ;;  %v1795_v17 = vld [vmem:[#allocation5 + $0x294] ss:$8 sps:$4 sm:$0xff]  }
  0x77   :  { %1039 = vmatpush1.bf16.msra.mxu1 %v1712_v19  ;;  %999 = vmatprep.subr.bf16.mxu0 %v1717_v20  ;;  %v1798_v18 = vld [vmem:[#allocation5 + $0x394] ss:$8 sps:$4 sm:$0xff]   ;;  %v1793_v19 = vld [vmem:[#allocation5 + $0x290] ss:$8 sps:$4 sm:$0xff]  }
  0x78   :  { %1040 = vmatprep.subr.bf16.mxu1 %v1720_v21  ;;  %1029 = vmatprep.mubr.bf16.mxu0 %v132_v55  ;;  %v1796_v20 = vld [vmem:[#allocation5 + $0x390] ss:$8 sps:$4 sm:$0xff]   ;;  %v1801_v21 = vld [vmem:[#allocation5 + $0x284] ss:$8 sps:$4 sm:$0xff]  }
  0x79   :  { %1070 = vmatprep.mubr.bf16.mxu1 %v134_v59  ;;  %v267_v59 = vsub.s32 0, %v2002_v43 }
  0x7a   :  { %1000 = vmatpush1.bf16.msra.mxu0 %v1715_v22  ;;  %v1804_v22 = vld [vmem:[#allocation5 + $0x384] ss:$8 sps:$4 sm:$0xff]  }
  0x7b   :  { %1041 = vmatpush1.bf16.msra.mxu1 %v1718_v23  ;;  %1001 = vmatprep.subr.bf16.mxu0 %v1723_v24  ;;  %v1799_v23 = vld [vmem:[#allocation5 + $0x280] ss:$8 sps:$4 sm:$0xff]  }
  0x7c   :  { %1042 = vmatprep.subr.bf16.mxu1 %v1726_v25  ;;  %v1802_v24 = vld [vmem:[#allocation5 + $0x380] ss:$8 sps:$4 sm:$0xff]   ;;  %v131_v25 = vpack.c.bf16 %v2010_v46, %v2010_v46  ;;  %v1823_v46 = vld [vmem:[#allocation8 + $0x30] sm:$0xff]  }
  0x7e   :  { %1002 = vmatpush1.bf16.msra.mxu0 %v1721_v26  ;;  %v133_v26 = vpack.c.bf16 %v2015_v52, %v2015_v52 }
  0x7f   :  { %1043 = vmatpush1.bf16.msra.mxu1 %v1724_v27  ;;  %1003 = vmatprep.subr.bf16.mxu0 %v1729_v28  ;;  %v1806_v27 = vld [vmem:[#allocation7 + $0x78] sm:$0xff]  }
  0x80   :  { %1044 = vmatprep.subr.bf16.mxu1 %v1732_v29  ;;  %v1807_v28 = vld [vmem:[#allocation7 + $0x38] sm:$0xff]   ;;  %v1808_v29 = vld [vmem:[#allocation7 + $0x70] sm:$0xff]  }
  0x82   :  { %1004 = vmatpush1.bf16.msra.mxu0 %v1727_v30  ;;  %v1809_v30 = vld [vmem:[#allocation7 + $0x30] sm:$0xff]  }
  0x83   :  { %1045 = vmatpush1.bf16.msra.mxu1 %v1730_v31  ;;  %1005 = vmatprep.subr.bf16.mxu0 %v1735_v32  ;;  %v1810_v31 = vld [vmem:[#allocation7 + $0x68] sm:$0xff]  }
  0x84   :  { %1046 = vmatprep.subr.bf16.mxu1 %v1738_v33  ;;  %v1811_v32 = vld [vmem:[#allocation7 + $0x28] sm:$0xff]   ;;  %v1812_v33 = vld [vmem:[#allocation7 + $0x60] sm:$0xff]  }
  0x86   :  { %1006 = vmatpush1.bf16.msra.mxu0 %v1733_v34  ;;  %v1813_v34 = vld [vmem:[#allocation7 + $0x20] sm:$0xff]  }
  0x87   :  { %1047 = vmatpush1.bf16.msra.mxu1 %v1736_v35  ;;  %1007 = vmatprep.subr.bf16.mxu0 %v1741_v36  ;;  %v1814_v35 = vld [vmem:[#allocation7 + $0x58] sm:$0xff]  }
  0x88   :  { %1048 = vmatprep.subr.bf16.mxu1 %v1744_v37  ;;  %v1815_v36 = vld [vmem:[#allocation7 + $0x18] sm:$0xff]   ;;  %v1816_v37 = vld [vmem:[#allocation7 + $0x50] sm:$0xff]  }
  0x8a   :  { %1008 = vmatpush1.bf16.msra.mxu0 %v1739_v38  ;;  %v1817_v38 = vld [vmem:[#allocation7 + $0x10] sm:$0xff]  }
  0x8b   :  { %1049 = vmatpush1.bf16.msra.mxu1 %v1742_v39  ;;  %1009 = vmatprep.subr.bf16.mxu0 %v1747_v40  ;;  %v1818_v39 = vld [vmem:[#allocation7 + $0x48] sm:$0xff]  }
  0x8c   :  { %1050 = vmatprep.subr.bf16.mxu1 %v1750_v41  ;;  %v1819_v40 = vld [vmem:[#allocation7 + $0x8] sm:$0xff]   ;;  %v1820_v41 = vld [vmem:[#allocation7 + $0x40] sm:$0xff]  }
  0x8e   :  { %1010 = vmatpush1.bf16.msra.mxu0 %v1745_v44  ;;  %v1822_v44 = vld [vmem:[#allocation8 + $0x38] sm:$0xff]  }
  0x8f   :  { %1051 = vmatpush1.bf16.msra.mxu1 %v1748_v45  ;;  %1011 = vmatprep.subr.bf16.mxu0 %v1753_v48  ;;  %v1947_v45 = vmov 0.0   ;;  %v1825_v48 = vld [vmem:[#allocation8 + $0x20] sm:$0xff]  }
  0x90   :  { %1052 = vmatprep.subr.bf16.mxu1 %v1756_v50  ;;  %v1826_v50 = vld [vmem:[#allocation8 + $0x18] sm:$0xff]  }
  0x92   :  { %1012 = vmatpush1.bf16.msra.mxu0 %v1751_v53 }
  0x93   :  { %1053 = vmatpush1.bf16.msra.mxu1 %v1754_v54  ;;  %1013 = vmatprep.subr.bf16.mxu0 %v1759_v57 }
  0x94   :  { %1054 = vmatprep.subr.bf16.mxu1 %v1762_v58 }
  0x96   :  { %1014 = vmatpush2.bf16.msra.mxu0 %v1757_v60  ;;  %v263_v60 = vld [vmem:[%s2048_s2] sm:$0x3] }
  0x97   :  { %1055 = vmatpush2.bf16.msra.mxu1 %v1760_v61  ;;  %1015 = vmatprep.subr.bf16.mxu0 %v1765_v49  ;;  %v271_v61 = vsub.s32 1, %v2002_v43  ;;  %v268_v49 = vrot.slane %v263_v60, %v267_v59 }
  0x98   :  { %1056 = vmatprep.subr.bf16.mxu1 %v1768_v62 }
  0x99   :  { %v272_v62 = vrot.slane %v263_v60, %v271_v61 }
  0x9a   :  { %1016 = vmatpush2.bf16.msra.mxu0 %v1763_v63 }
  0x9b   :  { %1057 = vmatpush2.bf16.msra.mxu1 %v1766_v0  ;;  %1017 = vmatprep.subr.bf16.mxu0 %v1771_v1 }
  0x9c   :  { %1058 = vmatprep.subr.bf16.mxu1 %v1774_v2 }
  0x9e   :  { %1018 = vmatpush2.bf16.msra.mxu0 %v1769_v3 }
  0x9f   :  { %1059 = vmatpush2.bf16.msra.mxu1 %v1772_v4  ;;  %1019 = vmatprep.subr.bf16.mxu0 %v1777_v5 }
  0xa0   :  { %1060 = vmatprep.subr.bf16.mxu1 %v1780_v6 }
  0xa2   :  { %1020 = vmatpush2.bf16.msra.mxu0 %v1775_v7 }
  0xa3   :  { %1061 = vmatpush2.bf16.msra.mxu1 %v1778_v8  ;;  %1021 = vmatprep.subr.bf16.mxu0 %v1783_v9 }
  0xa4   :  { %1062 = vmatprep.subr.bf16.mxu1 %v1786_v10 }
  0xa6   :  { %1022 = vmatpush2.bf16.msra.mxu0 %v1781_v11 }
  0xa7   :  { %1063 = vmatpush2.bf16.msra.mxu1 %v1784_v12  ;;  %1023 = vmatprep.subr.bf16.mxu0 %v1789_v13 }
  0xa8   :  { %1064 = vmatprep.subr.bf16.mxu1 %v1792_v14 }
  0xaa   :  { %1024 = vmatpush2.bf16.msra.mxu0 %v1787_v15 }
  0xab   :  { %1065 = vmatpush2.bf16.msra.mxu1 %v1790_v16  ;;  %1025 = vmatprep.subr.bf16.mxu0 %v1795_v17 }
  0xac   :  { %1066 = vmatprep.subr.bf16.mxu1 %v1798_v18 }
  0xae   :  { %1026 = vmatpush2.bf16.msra.mxu0 %v1793_v19 }
  0xaf   :  { %1067 = vmatpush2.bf16.msra.mxu1 %v1796_v20  ;;  %1027 = vmatprep.subr.bf16.mxu0 %v1801_v21  ;;  %v1827_v20 = vld [vmem:[#allocation8 + $0x10] sm:$0xff]   ;;  %v1828_v21 = vld [vmem:[#allocation8 + $0x8] sm:$0xff]  }
  0xb0   :  { %1068 = vmatprep.subr.bf16.mxu1 %v1804_v22  ;;  %v1829_v22 = vld [vmem:[#allocation8] sm:$0xff]  }
  0xb2   :  { %1028 = vmatpush2.bf16.msra.mxu0 %v1799_v23 }
  0xb3   :  { %1069 = vmatpush2.bf16.msra.mxu1 %v1802_v24  ;;  %1549 = vmatprep.subr.bf16.mxu0 %v1806_v27  ;;  %v1523_v24 = vld [vmem:[%s2050_s4] ss:$0 sm:$0xff]  ;;  %s1910_s4 = scalar_lea.vmem %s1385_s27, 32 }
  0xb4   :  { %1580 = vmatprep.subr.bf16.mxu1 %v1947_v45  ;;  %p1911_p6 = scmp.ne.s32.totalorder %s1385_s27, %s1910_s4  ;;  %p1916_p8 = scmp.lt.s32.totalorder %s1910_s4, %s1910_s4 }
  0xb5   :  { %1030 = vmatmul.mubr.bf16.vlgmr.msra.gmra.mxu0 %v131_v25 }
  0xb6   :  { %1071 = vmatmul.mubr.bf16.vlgmr.msra.gmra.mxu1 %v133_v26  ;;  %1550 = vmatpush3.bf16.msra.mxu0 %v1807_v28  ;;  %p1917_p9 = por %p1916_p8, %p1915_p7 }
  0xb7   :  { %1551 = vmatprep.subr.bf16.mxu0 %v1808_v29  ;;  %1581 = vmatpush3.bf16.msra.mxu1 %v1822_v44 }
  0xb8   :  { %1582 = vmatprep.subr.bf16.mxu1 %v1947_v45  ;;  %1596 = vmatprep.mubr.msk.bf16.mxu1 %vm1948_vm2, %v1947_v45  ;;  %p1918_p10 = pnand %p1917_p9, %p1911_p6 }
  0xba   :  { %1552 = vmatpush3.bf16.msra.mxu0 %v1809_v30 }
  0xbb   :  { %1553 = vmatprep.subr.bf16.mxu0 %v1810_v31  ;;  %1583 = vmatpush3.bf16.msra.mxu1 %v1823_v46 }
  0xbc   :  { %1584 = vmatprep.subr.bf16.mxu1 %v1947_v45 }
  0xbe   :  { %1554 = vmatpush3.bf16.msra.mxu0 %v1811_v32 }
  0xbf   :  { %1555 = vmatprep.subr.bf16.mxu0 %v1812_v33  ;;  %1585 = vmatpush3.bf16.msra.mxu1 %v1824_v47  ;;  %v1540_v33 = vld [vmem:[%s2052_s6] ss:$0 sm:$0xff] }
  0xc0   :  { %1586 = vmatprep.subr.bf16.mxu1 %v1947_v45 }
  0xc2   :  { %1556 = vmatpush3.bf16.msra.mxu0 %v1813_v34 }
  0xc3   :  { %1557 = vmatprep.subr.bf16.mxu0 %v1814_v35  ;;  %1587 = vmatpush3.bf16.msra.mxu1 %v1825_v48 }
  0xc4   :  { %1588 = vmatprep.subr.bf16.mxu1 %v1947_v45 }
  0xc6   :  { %1558 = vmatpush3.bf16.msra.mxu0 %v1815_v36 }
  0xc7   :  { %1559 = vmatprep.subr.bf16.mxu0 %v1816_v37  ;;  %1589 = vmatpush3.bf16.msra.mxu1 %v1826_v50 }
  0xc8   :  { %1590 = vmatprep.subr.bf16.mxu1 %v1947_v45 }
  0xca   :  { %1560 = vmatpush3.bf16.msra.mxu0 %v1817_v38 }
  0xcb   :  { %1561 = vmatprep.subr.bf16.mxu0 %v1818_v39  ;;  %1591 = vmatpush3.bf16.msra.mxu1 %v1827_v20 }
  0xcc   :  { %1592 = vmatprep.subr.bf16.mxu1 %v1947_v45 }
  0xce   :  { %1562 = vmatpush3.bf16.msra.mxu0 %v1819_v40 }
  0xcf   :  { %1563 = vmatprep.subr.bf16.mxu0 %v1820_v41  ;;  %1593 = vmatpush3.bf16.msra.mxu1 %v1828_v21 }
  0xd0   :  { %1594 = vmatprep.subr.bf16.mxu1 %v1947_v45 }
  0xd2   :  { %1564 = vmatpush3.bf16.msra.mxu0 %v1821_v42 }
  0xd3   :  { %1595 = vmatpush3.bf16.msra.mxu1 %v1829_v22 }
 0x135   :  { %v949_v51 = vpop.f32.mrf.mxu0 }
 0x136   :  { %v990_v52 = vpop.f32.mrf.mxu1  ;;  %v950_v63 = vadd.f32 %v949_v51, %v268_v49 }
 0x137   :  { %v951_v53 = vpop.f32.mrf.mxu0 }
 0x138   :  { %v992_v54 = vpop.f32.mrf.mxu1  ;;  %v952_v0 = vadd.f32 %v951_v53, %v272_v62  ;;  %v991_v1 = vadd.f32 %v990_v52, %v950_v63 }
 0x139   :  { %v953_v55 = vpop.f32.mrf.mxu0 }
 0x13a   :  { %v994_v56 = vpop.f32.mrf.mxu1  ;;  %v993_v4 = vadd.f32 %v992_v54, %v952_v0 }
 0x13b   :  { %v954_v57 = vpop.f32.mrf.mxu0 }
 0x13c   :  { %v995_v58 = vpop.f32.mrf.mxu1 }
 0x175   :  { %v1031_v2 = vpop.f32.mrf.mxu0 }
 0x176   :  { %v1072_v3 = vpop.f32.mrf.mxu1  ;;  %v1032_v5 = vadd.f32 %v1031_v2, %v991_v1 }
 0x177   :  { %v1033_v6 = vpop.f32.mrf.mxu0 }
 0x178   :  { %v1074_v7 = vpop.f32.mrf.mxu1  ;;  %v1073_v8 = vadd.f32 %v1072_v3, %v1032_v5  ;;  %v1034_v9 = vadd.f32 %v1033_v6, %v993_v4 }
 0x179   :  { %v1035_v10 = vpop.f32.mrf.mxu0 }
 0x17a   :  { %v1076_v11 = vpop.f32.mrf.mxu1  ;;  %vm1079_vm0 = vcmp.gt.f32.partialorder %v1073_v8, 0.0  ;;  %v1081_v12 = vmul.f32 0.01, %v1073_v8  ;;  %v1075_v13 = vadd.f32 %v1074_v7, %v1034_v9 }
 0x17b   :  { %v1036_v14 = vpop.f32.mrf.mxu0 }
 0x17c   :  { %v1077_v43 = vpop.f32.mrf.mxu1  ;;  %vm1080_vm1 = vcmp.gt.f32.partialorder %v1075_v13, 0.0  ;;  %v1082_v15 = vmul.f32 0.01, %v1075_v13  ;;  %v1083_v16 = vsel %vm1079_vm0, %v1073_v8, %v1081_v12 }
 0x17d   :  { %v1085_v19 = vpack.c.bf16 %v1083_v16, %v1083_v16 }
 0x17e   :  { %v1084_v17 = vsel %vm1080_vm1, %v1075_v13, %v1082_v15 }
 0x17f   :  { %v1086_v18 = vpack.c.bf16 %v1084_v17, %v1084_v17 }
 0x181   :  { %1254 = vmatprep.mubr.bf16.mxu0 %v1086_v18 }
 0x182   :  { %1255 = vmatmul.mubr.bf16.vlgmr.msra.gmra.mxu0 %v1085_v19 }
 0x242   :  { %v1565_v23 = vpop.f32.mrf.mxu0 }
 0x244   :  { %v1566_v25 = vpop.f32.mrf.mxu0 }
 0x245   :  { %v1567_v26 = vadd.f32 %v1566_v25, %v1565_v23 }
 0x246   :  { %v1568_v27 = vpop.f32.mrf.mxu0 }
 0x247   :  { %v1257_v28 = vadd.f32 %v1567_v26, %v1523_v24 }
 0x248   :  { %v1569_v29 = vpop.f32.mrf.mxu0 }
 0x249   :  { %vm1262_vm3 = vcmp.gt.f32.partialorder %v1257_v28, 0.0  ;;  %v1263_v30 = vmul.f32 0.01, %v1257_v28 }
 0x24b   :  { %v1264_v31 = vsel %vm1262_vm3, %v1257_v28, %v1263_v30 }
 0x24c   :  { %v1265_v32 = vpack.c.bf16 %v1264_v31, %v1264_v31 }
 0x24e   :  { %1597 = vmatmul.mubr.bf16.vlgmr.msra.gmra.mxu1 %v1265_v32 }
 0x30e   :  { %v1371_v34 = vpop.f32.mrf.mxu1 }
 0x30f   :  { %v1372_v35 = vadd.f32 %v1540_v33, %v1371_v34 }
 0x310   :  { %v1598_v36 = vpop.f32.mrf.mxu1 }
 0x311   :  { %1377 = vst [vmem:[#allocation10] sm:$0x3] %v1372_v35 }
 0x312   :  { %v1374_v37 = vpop.f32.mrf.mxu1 }
 0x313   :  { %1921 = shalt.err (!%p1918_p10)
}
 0x314   :  { %1387 = dma.vmem_to_hbm [thread:$0]  %s1385_s27, 32, %s2053_s7, [#allocation4]   ;;  %v1599_v38 = vpop.f32.mrf.mxu1 }
 0x315   :  { %1936 = dma.done.wait [#allocation4], 32  }
 0x316   :  { %1937 = vsyncadd [#allocation4], 4294967264 }
 0x317   :  { %1391 = vsyncpa [#allocation3], 1 }
 0x318   :  { %1392 = vsyncpa [#allocation6], 1 }
 0x319   :  { %1393 = vsyncpa [#allocation9], 1 }
 0x31a   :  { %1394 = vsyncpa [#allocation4], 1 }

// kernel: tpu_custom_call.1
= control target key start
LH: loop header
LB: loop body
LE: loop exit
PB: predicated region body
PF: predicated region fallthrough
CT: control target
= control target key end

     0   :  { %12 = vsyncpa [#allocation3], 0  ;;  %s2046_s0 = inlined_call_operand.hbm [shape: f32[2,1024], index: 0, kind: input, shape index: {}]   ;;  %s2047_s1 = inlined_call_operand.hbm [shape: bf16[1024,256], index: 1, kind: input, shape index: {}]   ;;  %s2048_s2 = inlined_call_operand.vmem [shape: f32[1,256], index: 2, kind: input, shape index: {}]   ;;  %s2049_s3 = inlined_call_operand.hbm [shape: bf16[256,128], index: 3, kind: input, shape index: {}]   ;;  %s2050_s4 = inlined_call_operand.vmem [shape: f32[1,128], index: 4, kind: input, shape index: {}]   ;;  %s2051_s5 = inlined_call_operand.hbm [shape: bf16[128,128], index: 5, kind: input, shape index: {}]   ;;  %s2052_s6 = inlined_call_operand.vmem [shape: f32[1,128], index: 6, kind: input, shape index: {}]   ;;  %s2053_s7 = inlined_call_operand.hbm [shape: f32[2,128], index: 7, kind: output, shape index: {}]  }
   0x1   :  { %13 = vsyncpa [#allocation6], 0 }
   0x2   :  { %14 = vsyncpa [#allocation9], 0 }
   0x3   :  { %15 = vsyncpa [#allocation4], 0  ;;  %s1938_s24 = smov [#allocation5]  }
   0x4   :  { %s31_s25 = sshll.u32 %s1938_s24, 4  ;;  %s32_s25 = int_to_ptr.vmem [resolvable:$true] %s31_s25 }
   0x5   :  { %s1838_s26 = scalar_lea.vmem %s32_s25, 16384  ;;  %p1843_p1 = scmp.lt.s32.totalorder %s32_s25, %s32_s25 }
   0x6   :  { %p1839_p0 = scmp.ne.s32.totalorder %s32_s25, %s1838_s26  ;;  %p1844_p2 = scmp.lt.s32.totalorder %s1838_s26, %s1838_s26 }
   0x8   :  { %p1845_p3 = por %p1844_p2, %p1843_p1 }
   0xa   :  { %p1846_p4 = pnand %p1845_p3, %p1839_p0 }
   0xc   :  { %1849 = shalt.err (!%p1846_p4)
}
   0xd   :  { %s1939_s27 = smov 128   ;;  %s1940_s28 = smov 8  }
   0xe   :  { %37 = dma.hbm_to_vmem [thread:$0]  %s2047_s1, 16384, %s32_s25, [#allocation6], %s1939_s27, %s1939_s27, %s1940_s28  }
   0xf   :  { %s1941_s8 = smov [#allocation2]   ;;  %s1942_s10 = smov [#allocation7]  }
  0x10   :  { %s22_s9 = sshll.u32 %s1941_s8, 4  ;;  %s45_s11 = sshll.u32 %s1942_s10, 4  ;;  %s23_s9 = int_to_ptr.vmem [resolvable:$true] %s22_s9  ;;  %s46_s11 = int_to_ptr.vmem [resolvable:$true] %s45_s11 }
  0x11   :  { %s1858_s12 = scalar_lea.vmem %s23_s9, 256  ;;  %p1863_p6 = scmp.lt.s32.totalorder %s23_s9, %s23_s9 }
  0x12   :  { %p1859_p5 = scmp.ne.s32.totalorder %s23_s9, %s1858_s12  ;;  %p1864_p7 = scmp.lt.s32.totalorder %s1858_s12, %s1858_s12 }
  0x14   :  { %p1865_p8 = por %p1864_p7, %p1863_p6 }
  0x16   :  { %p1866_p9 = pnand %p1865_p8, %p1859_p5 }
  0x18   :  { %1869 = shalt.err (!%p1866_p9)
}
  0x19   :  { %25 = dma.hbm_to_vmem [thread:$0]  %s2046_s0, 256, %s23_s9, [#allocation3]  }
  0x1a   :  { %s1878_s15 = scalar_lea.vmem %s46_s11, 2048  ;;  %p1883_p11 = scmp.lt.s32.totalorder %s46_s11, %s46_s11 }
  0x1b   :  { %p1879_p10 = scmp.ne.s32.totalorder %s46_s11, %s1878_s15  ;;  %p1884_p12 = scmp.lt.s32.totalorder %s1878_s15, %s1878_s15 }
  0x1d   :  { %p1885_p13 = por %p1884_p12, %p1883_p11 }
  0x1f   :  { %p1886_p0 = pnand %p1885_p13, %p1879_p10 }
  0x21   :  { %1889 = shalt.err (!%p1886_p0)
}
  0x22   :  { %s1943_s1 = smov 64   ;;  %s1944_s16 = smov 4  }
  0x23   :  { %51 = dma.hbm_to_vmem [thread:$0]  %s2049_s3, 2048, %s46_s11, [#allocation6], %s1943_s1, %s1943_s1, %s1944_s16  }
  0x24   :  { %s1945_s19 = smov [#allocation8]  }
  0x25   :  { %s59_s20 = sshll.u32 %s1945_s19, 4  ;;  %s60_s20 = int_to_ptr.vmem [resolvable:$true] %s59_s20 }
  0x26   :  { %s1898_s21 = scalar_lea.vmem %s60_s20, 1024  ;;  %p1903_p2 = scmp.lt.s32.totalorder %s60_s20, %s60_s20 }
  0x27   :  { %p1899_p1 = scmp.ne.s32.totalorder %s60_s20, %s1898_s21  ;;  %p1904_p3 = scmp.lt.s32.totalorder %s1898_s21, %s1898_s21 }
  0x29   :  { %p1905_p4 = por %p1904_p3, %p1903_p2 }
  0x2b   :  { %p1906_p5 = pnand %p1905_p4, %p1899_p1 }
  0x2d   :  { %1909 = shalt.err (!%p1906_p5)
}
  0x2e   :  { %65 = dma.hbm_to_vmem [thread:$0]  %s2051_s5, 1024, %s60_s20, [#allocation9], %s1943_s1, %s1943_s1, %s1944_s16  }
  0x2f   :  { %1930 = dma.done.wait [#allocation3], 256  }
  0x30   :  { %1931 = vsyncadd [#allocation3], 4294967040 }
  0x31   :  { %1932 = dma.done.wait [#allocation6], 18432  }
  0x32   :  { %1933 = vsyncadd [#allocation6], 4294948864 }
  0x33   :  { %1934 = dma.done.wait [#allocation9], 1024  }
  0x34   :  { %1935 = vsyncadd [#allocation9], 4294966272  ;;  %v1612_v0 = vld [vmem:[#allocation5 + $0x74] ss:$8 sps:$4 sm:$0xff]   ;;  %v1616_v2 = vld [vmem:[#allocation5 + $0x70] ss:$8 sps:$4 sm:$0xff]   ;;  %v89_v38 = vlaneseq }
  0x35   :  { %v1614_v1 = vld [vmem:[#allocation5 + $0x174] ss:$8 sps:$4 sm:$0xff]   ;;  %915 = vmatprep.subr.bf16.mxu0 %v1612_v0  ;;  %v1617_v3 = vld [vmem:[#allocation5 + $0x170] ss:$8 sps:$4 sm:$0xff]   ;;  %v1618_v4 = vld [vmem:[#allocation5 + $0x64] ss:$8 sps:$4 sm:$0xff]  }
  0x36   :  { %956 = vmatprep.subr.bf16.mxu1 %v1614_v1  ;;  %916 = vmatpush1.bf16.msra.mxu0 %v1616_v2  ;;  %v1620_v5 = vld [vmem:[#allocation5 + $0x164] ss:$8 sps:$4 sm:$0xff]   ;;  %v1622_v6 = vld [vmem:[#allocation5 + $0x60] ss:$8 sps:$4 sm:$0xff]   ;;  %v1624_v8 = vld [vmem:[#allocation5 + $0x54] ss:$8 sps:$4 sm:$0xff]  }
  0x37   :  { %957 = vmatpush1.bf16.msra.mxu1 %v1617_v3  ;;  %917 = vmatprep.subr.bf16.mxu0 %v1618_v4  ;;  %v1623_v7 = vld [vmem:[#allocation5 + $0x160] ss:$8 sps:$4 sm:$0xff]   ;;  %v1626_v9 = vld [vmem:[#allocation5 + $0x154] ss:$8 sps:$4 sm:$0xff]   ;;  %v1628_v10 = vld [vmem:[#allocation5 + $0x50] ss:$8 sps:$4 sm:$0xff]  }
  0x38   :  { %958 = vmatprep.subr.bf16.mxu1 %v1620_v5  ;;  %v1629_v11 = vld [vmem:[#allocation5 + $0x150] ss:$8 sps:$4 sm:$0xff]   ;;  %v1630_v12 = vld [vmem:[#allocation5 + $0x44] ss:$8 sps:$4 sm:$0xff]   ;;  %v1634_v14 = vld [vmem:[#allocation5 + $0x40] ss:$8 sps:$4 sm:$0xff]  }
  0x39   :  { %v1632_v13 = vld [vmem:[#allocation5 + $0x144] ss:$8 sps:$4 sm:$0xff]   ;;  %v1635_v15 = vld [vmem:[#allocation5 + $0x140] ss:$8 sps:$4 sm:$0xff]   ;;  %v1636_v16 = vld [vmem:[#allocation5 + $0x34] ss:$8 sps:$4 sm:$0xff]  }
  0x3a   :  { %918 = vmatpush1.bf16.msra.mxu0 %v1622_v6  ;;  %v1638_v17 = vld [vmem:[#allocation5 + $0x134] ss:$8 sps:$4 sm:$0xff]   ;;  %v1640_v18 = vld [vmem:[#allocation5 + $0x30] ss:$8 sps:$4 sm:$0xff]   ;;  %v1642_v20 = vld [vmem:[#allocation5 + $0x24] ss:$8 sps:$4 sm:$0xff]  }
  0x3b   :  { %959 = vmatpush1.bf16.msra.mxu1 %v1623_v7  ;;  %919 = vmatprep.subr.bf16.mxu0 %v1624_v8  ;;  %v1641_v19 = vld [vmem:[#allocation5 + $0x130] ss:$8 sps:$4 sm:$0xff]   ;;  %v1644_v21 = vld [vmem:[#allocation5 + $0x124] ss:$8 sps:$4 sm:$0xff]   ;;  %v1646_v22 = vld [vmem:[#allocation5 + $0x20] ss:$8 sps:$4 sm:$0xff]  }
  0x3c   :  { %960 = vmatprep.subr.bf16.mxu1 %v1626_v9  ;;  %v1647_v23 = vld [vmem:[#allocation5 + $0x120] ss:$8 sps:$4 sm:$0xff]   ;;  %v1648_v24 = vld [vmem:[#allocation5 + $0x14] ss:$8 sps:$4 sm:$0xff]   ;;  %v1652_v26 = vld [vmem:[#allocation5 + $0x10] ss:$8 sps:$4 sm:$0xff]  }
  0x3d   :  { %v1650_v25 = vld [vmem:[#allocation5 + $0x114] ss:$8 sps:$4 sm:$0xff]   ;;  %v1653_v27 = vld [vmem:[#allocation5 + $0x110] ss:$8 sps:$4 sm:$0xff]   ;;  %v1654_v28 = vld [vmem:[#allocation5 + $0x4] ss:$8 sps:$4 sm:$0xff]  }
  0x3e   :  { %920 = vmatpush1.bf16.msra.mxu0 %v1628_v10  ;;  %v1656_v29 = vld [vmem:[#allocation5 + $0x104] ss:$8 sps:$4 sm:$0xff]   ;;  %v1658_v30 = vld [vmem:[#allocation5] ss:$8 sps:$4 sm:$0xff]   ;;  %v1660_v32 = vld [vmem:[#allocation5 + $0xf4] ss:$8 sps:$4 sm:$0xff]  }
  0x3f   :  { %961 = vmatpush1.bf16.msra.mxu1 %v1629_v11  ;;  %921 = vmatprep.subr.bf16.mxu0 %v1630_v12  ;;  %v1659_v31 = vld [vmem:[#allocation5 + $0x100] ss:$8 sps:$4 sm:$0xff]   ;;  %v1662_v33 = vld [vmem:[#allocation5 + $0x1f4] ss:$8 sps:$4 sm:$0xff]   ;;  %v1664_v34 = vld [vmem:[#allocation5 + $0xf0] ss:$8 sps:$4 sm:$0xff]  }
  0x40   :  { %962 = vmatprep.subr.bf16.mxu1 %v1632_v13  ;;  %v1665_v35 = vld [vmem:[#allocation5 + $0x1f0] ss:$8 sps:$4 sm:$0xff]   ;;  %v1946_v36 = vmov 1983009808   ;;  %v1666_v39 = vld [vmem:[#allocation5 + $0xe4] ss:$8 sps:$4 sm:$0xff]  }
  0x41   :  { %v87_v37 = vunpack.c.l.s4 %v1946_v36  ;;  %v1668_v40 = vld [vmem:[#allocation5 + $0x1e4] ss:$8 sps:$4 sm:$0xff]   ;;  %v1670_v41 = vld [vmem:[#allocation5 + $0xe0] ss:$8 sps:$4 sm:$0xff]   ;;  %v2002_v43 = vshrl.u32 %v89_v38, 7  ;;  %v81_v52 = vld [vmem:[#allocation2] sm:$0xff] }
  0x42   :  { %922 = vmatpush1.bf16.msra.mxu0 %v1634_v14  ;;  %v1671_v44 = vld [vmem:[#allocation5 + $0x1e0] ss:$8 sps:$4 sm:$0xff]   ;;  %v1672_v45 = vld [vmem:[#allocation5 + $0xd4] ss:$8 sps:$4 sm:$0xff]   ;;  %v1676_v47 = vld [vmem:[#allocation5 + $0xd0] ss:$8 sps:$4 sm:$0xff]   ;;  %v85_v55 = vcombine.high %v81_v52, %v81_v52 }
  0x43   :  { %963 = vmatpush1.bf16.msra.mxu1 %v1635_v15  ;;  %923 = vmatprep.subr.bf16.mxu0 %v1636_v16  ;;  %v88_v42 = vunpack.c.0.s8 %v87_v37  ;;  %v1674_v46 = vld [vmem:[#allocation5 + $0x1d4] ss:$8 sps:$4 sm:$0xff]   ;;  %v1677_v48 = vld [vmem:[#allocation5 + $0x1d0] ss:$8 sps:$4 sm:$0xff]   ;;  %v1678_v50 = vld [vmem:[#allocation5 + $0xc4] ss:$8 sps:$4 sm:$0xff]  }
  0x44   :  { %964 = vmatprep.subr.bf16.mxu1 %v1638_v17  ;;  %v1680_v51 = vld [vmem:[#allocation5 + $0x1c4] ss:$8 sps:$4 sm:$0xff]   ;;  %v1682_v53 = vld [vmem:[#allocation5 + $0xc0] ss:$8 sps:$4 sm:$0xff]   ;;  %v1684_v57 = vld [vmem:[#allocation5 + $0xb4] ss:$8 sps:$4 sm:$0xff]  }
  0x45   :  { %v2005_v49 = vsub.s32 %v88_v42, %v2002_v43  ;;  %v1683_v56 = vld [vmem:[#allocation5 + $0x1c0] ss:$8 sps:$4 sm:$0xff]   ;;  %v1686_v58 = vld [vmem:[#allocation5 + $0x1b4] ss:$8 sps:$4 sm:$0xff]   ;;  %v1688_v61 = vld [vmem:[#allocation5 + $0xb0] ss:$8 sps:$4 sm:$0xff]  }
  0x46   :  { %924 = vmatpush1.bf16.msra.mxu0 %v1640_v18  ;;  %v1689_v0 = vld [vmem:[#allocation5 + $0x1b0] ss:$8 sps:$4 sm:$0xff]   ;;  %v1690_v1 = vld [vmem:[#allocation5 + $0xa4] ss:$8 sps:$4 sm:$0xff]   ;;  %v1694_v4 = vld [vmem:[#allocation5 + $0xa0] ss:$8 sps:$4 sm:$0xff]  }
  0x47   :  { %965 = vmatpush1.bf16.msra.mxu1 %v1641_v19  ;;  %925 = vmatprep.subr.bf16.mxu0 %v1642_v20  ;;  %v92_v54 = vrot.slane %v81_v52, %v2005_v49  ;;  %v99_v60 = vrot.slane %v85_v55, %v2005_v49  ;;  %v1692_v2 = vld [vmem:[#allocation5 + $0x1a4] ss:$8 sps:$4 sm:$0xff]   ;;  %v1695_v5 = vld [vmem:[#allocation5 + $0x1a0] ss:$8 sps:$4 sm:$0xff]   ;;  %v1696_v6 = vld [vmem:[#allocation5 + $0x94] ss:$8 sps:$4 sm:$0xff]  }
  0x48   :  { %966 = vmatprep.subr.bf16.mxu1 %v1644_v21  ;;  %v1698_v7 = vld [vmem:[#allocation5 + $0x194] ss:$8 sps:$4 sm:$0xff]   ;;  %v1700_v8 = vld [vmem:[#allocation5 + $0x90] ss:$8 sps:$4 sm:$0xff]   ;;  %v1702_v10 = vld [vmem:[#allocation5 + $0x84] ss:$8 sps:$4 sm:$0xff]  }
  0x49   :  { %v100_v59 = vcombine.high %v92_v54, %v92_v54  ;;  %v101_v63 = vcombine.high %v99_v60, %v99_v60  ;;  %v1701_v9 = vld [vmem:[#allocation5 + $0x190] ss:$8 sps:$4 sm:$0xff]   ;;  %v1704_v11 = vld [vmem:[#allocation5 + $0x184] ss:$8 sps:$4 sm:$0xff]   ;;  %v1706_v12 = vld [vmem:[#allocation5 + $0x80] ss:$8 sps:$4 sm:$0xff]   ;;  %v127_v16 = vpack.c.bf16 %v92_v54, %v92_v54  ;;  %v129_v17 = vpack.c.bf16 %v99_v60, %v99_v60 }
  0x4a   :  { %926 = vmatpush1.bf16.msra.mxu0 %v1646_v22  ;;  %v1707_v13 = vld [vmem:[#allocation5 + $0x180] ss:$8 sps:$4 sm:$0xff]   ;;  %v1711_v14 = vld [vmem:[#allocation5 + $0x274] ss:$8 sps:$4 sm:$0xff]   ;;  %v1709_v18 = vld [vmem:[#allocation5 + $0x270] ss:$8 sps:$4 sm:$0xff]  }
  0x4b   :  { %967 = vmatpush1.bf16.msra.mxu1 %v1647_v23  ;;  %927 = vmatprep.subr.bf16.mxu0 %v1648_v24  ;;  %v128_v62 = vpack.c.bf16 %v100_v59, %v100_v59  ;;  %v130_v3 = vpack.c.bf16 %v101_v63, %v101_v63  ;;  %v1714_v15 = vld [vmem:[#allocation5 + $0x374] ss:$8 sps:$4 sm:$0xff]   ;;  %v1712_v19 = vld [vmem:[#allocation5 + $0x370] ss:$8 sps:$4 sm:$0xff]   ;;  %v1717_v20 = vld [vmem:[#allocation5 + $0x264] ss:$8 sps:$4 sm:$0xff]  }
  0x4c   :  { %968 = vmatprep.subr.bf16.mxu1 %v1650_v25  ;;  %v1720_v21 = vld [vmem:[#allocation5 + $0x364] ss:$8 sps:$4 sm:$0xff]   ;;  %v1715_v22 = vld [vmem:[#allocation5 + $0x260] ss:$8 sps:$4 sm:$0xff]   ;;  %v1723_v24 = vld [vmem:[#allocation5 + $0x254] ss:$8 sps:$4 sm:$0xff]  }
  0x4d   :  { %947 = vmatprep.mubr.bf16.mxu0 %v128_v62  ;;  %988 = vmatprep.mubr.bf16.mxu1 %v130_v3  ;;  %v1718_v23 = vld [vmem:[#allocation5 + $0x360] ss:$8 sps:$4 sm:$0xff]   ;;  %v1726_v25 = vld [vmem:[#allocation5 + $0x354] ss:$8 sps:$4 sm:$0xff]   ;;  %v1741_v36 = vld [vmem:[#allocation5 + $0x224] ss:$8 sps:$4 sm:$0xff]  }
  0x4e   :  { %928 = vmatpush1.bf16.msra.mxu0 %v1652_v26  ;;  %v1721_v26 = vld [vmem:[#allocation5 + $0x250] ss:$8 sps:$4 sm:$0xff]   ;;  %v1744_v37 = vld [vmem:[#allocation5 + $0x324] ss:$8 sps:$4 sm:$0xff]   ;;  %v1739_v38 = vld [vmem:[#allocation5 + $0x220] ss:$8 sps:$4 sm:$0xff]  }
  0x4f   :  { %969 = vmatpush1.bf16.msra.mxu1 %v1653_v27  ;;  %929 = vmatprep.subr.bf16.mxu0 %v1654_v28  ;;  %v1724_v27 = vld [vmem:[#allocation5 + $0x350] ss:$8 sps:$4 sm:$0xff]   ;;  %v1729_v28 = vld [vmem:[#allocation5 + $0x244] ss:$8 sps:$4 sm:$0xff]   ;;  %v1754_v54 = vld [vmem:[#allocation5 + $0x300] ss:$8 sps:$4 sm:$0xff]  }
  0x50   :  { %970 = vmatprep.subr.bf16.mxu1 %v1656_v29  ;;  %v1732_v29 = vld [vmem:[#allocation5 + $0x344] ss:$8 sps:$4 sm:$0xff]   ;;  %v82_v42 = vld [vmem:[#allocation2 + $0x8] sm:$0xff]  ;;  %v1763_v63 = vld [vmem:[#allocation5 + $0x2e0] ss:$8 sps:$4 sm:$0xff]   ;;  %vm1948_vm2 = vmmov 0  }
  0x51   :  { %v1757_v60 = vld [vmem:[#allocation5 + $0x2f0] ss:$8 sps:$4 sm:$0xff]   ;;  %v1768_v62 = vld [vmem:[#allocation5 + $0x3e4] ss:$8 sps:$4 sm:$0xff]   ;;  %s1949_s26 = smov [#allocation10]  }
  0x52   :  { %930 = vmatpush1.bf16.msra.mxu0 %v1658_v30  ;;  %v1727_v30 = vld [vmem:[#allocation5 + $0x240] ss:$8 sps:$4 sm:$0xff]   ;;  %v1769_v3 = vld [vmem:[#allocation5 + $0x2d0] ss:$8 sps:$4 sm:$0xff]   ;;  %s1384_s27 = sshll.u32 %s1949_s26, 4  ;;  %s1385_s27 = int_to_ptr.vmem [resolvable:$true] %s1384_s27 }
  0x53   :  { %971 = vmatpush1.bf16.msra.mxu1 %v1659_v31  ;;  %931 = vmatprep.subr.bf16.mxu0 %v1660_v32  ;;  %v1730_v31 = vld [vmem:[#allocation5 + $0x340] ss:$8 sps:$4 sm:$0xff]   ;;  %v1735_v32 = vld [vmem:[#allocation5 + $0x234] ss:$8 sps:$4 sm:$0xff]   ;;  %p1915_p7 = scmp.lt.s32.totalorder %s1385_s27, %s1385_s27 }
  0x54   :  { %972 = vmatprep.subr.bf16.mxu1 %v1662_v33  ;;  %v1738_v33 = vld [vmem:[#allocation5 + $0x334] ss:$8 sps:$4 sm:$0xff]  }
  0x56   :  { %932 = vmatpush2.bf16.msra.mxu0 %v1664_v34  ;;  %v1733_v34 = vld [vmem:[#allocation5 + $0x230] ss:$8 sps:$4 sm:$0xff]  }
  0x57   :  { %973 = vmatpush2.bf16.msra.mxu1 %v1665_v35  ;;  %933 = vmatprep.subr.bf16.mxu0 %v1666_v39  ;;  %v1736_v35 = vld [vmem:[#allocation5 + $0x330] ss:$8 sps:$4 sm:$0xff]   ;;  %v1742_v39 = vld [vmem:[#allocation5 + $0x320] ss:$8 sps:$4 sm:$0xff]  }
  0x58   :  { %974 = vmatprep.subr.bf16.mxu1 %v1668_v40  ;;  %v1747_v40 = vld [vmem:[#allocation5 + $0x214] ss:$8 sps:$4 sm:$0xff]  }
  0x5a   :  { %934 = vmatpush2.bf16.msra.mxu0 %v1670_v41  ;;  %v1750_v41 = vld [vmem:[#allocation5 + $0x314] ss:$8 sps:$4 sm:$0xff]  }
  0x5b   :  { %975 = vmatpush2.bf16.msra.mxu1 %v1671_v44  ;;  %935 = vmatprep.subr.bf16.mxu0 %v1672_v45  ;;  %v1745_v44 = vld [vmem:[#allocation5 + $0x210] ss:$8 sps:$4 sm:$0xff]  }
  0x5c   :  { %976 = vmatprep.subr.bf16.mxu1 %v1674_v46  ;;  %v1748_v45 = vld [vmem:[#allocation5 + $0x310] ss:$8 sps:$4 sm:$0xff]   ;;  %v2010_v46 = vrot.slane %v82_v42, %v2005_v49 }
  0x5e   :  { %936 = vmatpush2.bf16.msra.mxu0 %v1676_v47  ;;  %v102_v47 = vcombine.high %v82_v42, %v82_v42  ;;  %v1821_v42 = vld [vmem:[#allocation7] sm:$0xff]  }
  0x5f   :  { %977 = vmatpush2.bf16.msra.mxu1 %v1677_v48  ;;  %937 = vmatprep.subr.bf16.mxu0 %v1678_v50  ;;  %v1753_v48 = vld [vmem:[#allocation5 + $0x204] ss:$8 sps:$4 sm:$0xff]  }
  0x60   :  { %978 = vmatprep.subr.bf16.mxu1 %v1680_v51  ;;  %v1756_v50 = vld [vmem:[#allocation5 + $0x304] ss:$8 sps:$4 sm:$0xff]   ;;  %v117_v51 = vcombine.high %v2010_v46, %v2010_v46  ;;  %v2015_v52 = vrot.slane %v102_v47, %v2005_v49 }
  0x61   :  { %v1765_v49 = vld [vmem:[#allocation5 + $0x2e4] ss:$8 sps:$4 sm:$0xff]  }
  0x62   :  { %938 = vmatpush2.bf16.msra.mxu0 %v1682_v53  ;;  %v1751_v53 = vld [vmem:[#allocation5 + $0x200] ss:$8 sps:$4 sm:$0xff]   ;;  %v132_v55 = vpack.c.bf16 %v117_v51, %v117_v51 }
  0x63   :  { %979 = vmatpush2.bf16.msra.mxu1 %v1683_v56  ;;  %939 = vmatprep.subr.bf16.mxu0 %v1684_v57  ;;  %v118_v56 = vcombine.high %v2015_v52, %v2015_v52  ;;  %v1759_v57 = vld [vmem:[#allocation5 + $0x2f4] ss:$8 sps:$4 sm:$0xff]   ;;  %v1824_v47 = vld [vmem:[#allocation8 + $0x28] sm:$0xff]  }
  0x64   :  { %980 = vmatprep.subr.bf16.mxu1 %v1686_v58  ;;  %v1762_v58 = vld [vmem:[#allocation5 + $0x3f4] ss:$8 sps:$4 sm:$0xff]  }
  0x65   :  { %v134_v59 = vpack.c.bf16 %v118_v56, %v118_v56 }
  0x66   :  { %940 = vmatpush2.bf16.msra.mxu0 %v1688_v61  ;;  %v1760_v61 = vld [vmem:[#allocation5 + $0x3f0] ss:$8 sps:$4 sm:$0xff]  }
  0x67   :  { %981 = vmatpush2.bf16.msra.mxu1 %v1689_v0  ;;  %941 = vmatprep.subr.bf16.mxu0 %v1690_v1  ;;  %v1766_v0 = vld [vmem:[#allocation5 + $0x3e0] ss:$8 sps:$4 sm:$0xff]   ;;  %v1771_v1 = vld [vmem:[#allocation5 + $0x2d4] ss:$8 sps:$4 sm:$0xff]  }
  0x68   :  { %982 = vmatprep.subr.bf16.mxu1 %v1692_v2  ;;  %v1774_v2 = vld [vmem:[#allocation5 + $0x3d4] ss:$8 sps:$4 sm:$0xff]  }
  0x6a   :  { %942 = vmatpush2.bf16.msra.mxu0 %v1694_v4  ;;  %v1772_v4 = vld [vmem:[#allocation5 + $0x3d0] ss:$8 sps:$4 sm:$0xff]  }
  0x6b   :  { %983 = vmatpush2.bf16.msra.mxu1 %v1695_v5  ;;  %943 = vmatprep.subr.bf16.mxu0 %v1696_v6  ;;  %v1777_v5 = vld [vmem:[#allocation5 + $0x2c4] ss:$8 sps:$4 sm:$0xff]  }
  0x6c   :  { %984 = vmatprep.subr.bf16.mxu1 %v1698_v7  ;;  %v1780_v6 = vld [vmem:[#allocation5 + $0x3c4] ss:$8 sps:$4 sm:$0xff]   ;;  %v1775_v7 = vld [vmem:[#allocation5 + $0x2c0] ss:$8 sps:$4 sm:$0xff]  }
  0x6e   :  { %944 = vmatpush2.bf16.msra.mxu0 %v1700_v8  ;;  %v1778_v8 = vld [vmem:[#allocation5 + $0x3c0] ss:$8 sps:$4 sm:$0xff]  }
  0x6f   :  { %985 = vmatpush2.bf16.msra.mxu1 %v1701_v9  ;;  %945 = vmatprep.subr.bf16.mxu0 %v1702_v10  ;;  %v1783_v9 = vld [vmem:[#allocation5 + $0x2b4] ss:$8 sps:$4 sm:$0xff]  }
  0x70   :  { %986 = vmatprep.subr.bf16.mxu1 %v1704_v11  ;;  %v1786_v10 = vld [vmem:[#allocation5 + $0x3b4] ss:$8 sps:$4 sm:$0xff]   ;;  %v1781_v11 = vld [vmem:[#allocation5 + $0x2b0] ss:$8 sps:$4 sm:$0xff]  }
  0x72   :  { %946 = vmatpush2.bf16.msra.mxu0 %v1706_v12  ;;  %v1784_v12 = vld [vmem:[#allocation5 + $0x3b0] ss:$8 sps:$4 sm:$0xff]  }
  0x73   :  { %987 = vmatpush2.bf16.msra.mxu1 %v1707_v13  ;;  %997 = vmatprep.subr.bf16.mxu0 %v1711_v14  ;;  %v1789_v13 = vld [vmem:[#allocation5 + $0x2a4] ss:$8 sps:$4 sm:$0xff]  }
  0x74   :  { %1038 = vmatprep.subr.bf16.mxu1 %v1714_v15  ;;  %v1792_v14 = vld [vmem:[#allocation5 + $0x3a4] ss:$8 sps:$4 sm:$0xff]   ;;  %v1787_v15 = vld [vmem:[#allocation5 + $0x2a0] ss:$8 sps:$4 sm:$0xff]  }
  0x75   :  { %948 = vmatmul.mubr.bf16.vlgmr.msra.gmra.mxu0 %v127_v16  ;;  %v1790_v16 = vld [vmem:[#allocation5 + $0x3a0] ss:$8 sps:$4 sm:$0xff]  }
  0x76   :  { %989 = vmatmul.mubr.bf16.vlgmr.msra.gmra.mxu1 %v129_v17  ;;  %998 = vmatpush1.bf16.msra.mxu0 %v1709_v18  ;;  %v1795_v17 = vld [vmem:[#allocation5 + $0x294] ss:$8 sps:$4 sm:$0xff]  }
  0x77   :  { %1039 = vmatpush1.bf16.msra.mxu1 %v1712_v19  ;;  %999 = vmatprep.subr.bf16.mxu0 %v1717_v20  ;;  %v1798_v18 = vld [vmem:[#allocation5 + $0x394] ss:$8 sps:$4 sm:$0xff]   ;;  %v1793_v19 = vld [vmem:[#allocation5 + $0x290] ss:$8 sps:$4 sm:$0xff]  }
  0x78   :  { %1040 = vmatprep.subr.bf16.mxu1 %v1720_v21  ;;  %1029 = vmatprep.mubr.bf16.mxu0 %v132_v55  ;;  %v1796_v20 = vld [vmem:[#allocation5 + $0x390] ss:$8 sps:$4 sm:$0xff]   ;;  %v1801_v21 = vld [vmem:[#allocation5 + $0x284] ss:$8 sps:$4 sm:$0xff]  }
  0x79   :  { %1070 = vmatprep.mubr.bf16.mxu1 %v134_v59  ;;  %v267_v59 = vsub.s32 0, %v2002_v43 }
  0x7a   :  { %1000 = vmatpush1.bf16.msra.mxu0 %v1715_v22  ;;  %v1804_v22 = vld [vmem:[#allocation5 + $0x384] ss:$8 sps:$4 sm:$0xff]  }
  0x7b   :  { %1041 = vmatpush1.bf16.msra.mxu1 %v1718_v23  ;;  %1001 = vmatprep.subr.bf16.mxu0 %v1723_v24  ;;  %v1799_v23 = vld [vmem:[#allocation5 + $0x280] ss:$8 sps:$4 sm:$0xff]  }
  0x7c   :  { %1042 = vmatprep.subr.bf16.mxu1 %v1726_v25  ;;  %v1802_v24 = vld [vmem:[#allocation5 + $0x380] ss:$8 sps:$4 sm:$0xff]   ;;  %v131_v25 = vpack.c.bf16 %v2010_v46, %v2010_v46  ;;  %v1823_v46 = vld [vmem:[#allocation8 + $0x30] sm:$0xff]  }
  0x7e   :  { %1002 = vmatpush1.bf16.msra.mxu0 %v1721_v26  ;;  %v133_v26 = vpack.c.bf16 %v2015_v52, %v2015_v52 }
  0x7f   :  { %1043 = vmatpush1.bf16.msra.mxu1 %v1724_v27  ;;  %1003 = vmatprep.subr.bf16.mxu0 %v1729_v28  ;;  %v1806_v27 = vld [vmem:[#allocation7 + $0x78] sm:$0xff]  }
  0x80   :  { %1044 = vmatprep.subr.bf16.mxu1 %v1732_v29  ;;  %v1807_v28 = vld [vmem:[#allocation7 + $0x38] sm:$0xff]   ;;  %v1808_v29 = vld [vmem:[#allocation7 + $0x70] sm:$0xff]  }
  0x82   :  { %1004 = vmatpush1.bf16.msra.mxu0 %v1727_v30  ;;  %v1809_v30 = vld [vmem:[#allocation7 + $0x30] sm:$0xff]  }
  0x83   :  { %1045 = vmatpush1.bf16.msra.mxu1 %v1730_v31  ;;  %1005 = vmatprep.subr.bf16.mxu0 %v1735_v32  ;;  %v1810_v31 = vld [vmem:[#allocation7 + $0x68] sm:$0xff]  }
  0x84   :  { %1046 = vmatprep.subr.bf16.mxu1 %v1738_v33  ;;  %v1811_v32 = vld [vmem:[#allocation7 + $0x28] sm:$0xff]   ;;  %v1812_v33 = vld [vmem:[#allocation7 + $0x60] sm:$0xff]  }
  0x86   :  { %1006 = vmatpush1.bf16.msra.mxu0 %v1733_v34  ;;  %v1813_v34 = vld [vmem:[#allocation7 + $0x20] sm:$0xff]  }
  0x87   :  { %1047 = vmatpush1.bf16.msra.mxu1 %v1736_v35  ;;  %1007 = vmatprep.subr.bf16.mxu0 %v1741_v36  ;;  %v1814_v35 = vld [vmem:[#allocation7 + $0x58] sm:$0xff]  }
  0x88   :  { %1048 = vmatprep.subr.bf16.mxu1 %v1744_v37  ;;  %v1815_v36 = vld [vmem:[#allocation7 + $0x18] sm:$0xff]   ;;  %v1816_v37 = vld [vmem:[#allocation7 + $0x50] sm:$0xff]  }
  0x8a   :  { %1008 = vmatpush1.bf16.msra.mxu0 %v1739_v38  ;;  %v1817_v38 = vld [vmem:[#allocation7 + $0x10] sm:$0xff]  }
  0x8b   :  { %1049 = vmatpush1.bf16.msra.mxu1 %v1742_v39  ;;  %1009 = vmatprep.subr.bf16.mxu0 %v1747_v40  ;;  %v1818_v39 = vld [vmem:[#allocation7 + $0x48] sm:$0xff]  }
  0x8c   :  { %1050 = vmatprep.subr.bf16.mxu1 %v1750_v41  ;;  %v1819_v40 = vld [vmem:[#allocation7 + $0x8] sm:$0xff]   ;;  %v1820_v41 = vld [vmem:[#allocation7 + $0x40] sm:$0xff]  }
  0x8e   :  { %1010 = vmatpush1.bf16.msra.mxu0 %v1745_v44  ;;  %v1822_v44 = vld [vmem:[#allocation8 + $0x38] sm:$0xff]  }
  0x8f   :  { %1051 = vmatpush1.bf16.msra.mxu1 %v1748_v45  ;;  %1011 = vmatprep.subr.bf16.mxu0 %v1753_v48  ;;  %v1947_v45 = vmov 0.0   ;;  %v1825_v48 = vld [vmem:[#allocation8 + $0x20] sm:$0xff]  }
  0x90   :  { %1052 = vmatprep.subr.bf16.mxu1 %v1756_v50  ;;  %v1826_v50 = vld [vmem:[#allocation8 + $0x18] sm:$0xff]  }
  0x92   :  { %1012 = vmatpush1.bf16.msra.mxu0 %v1751_v53 }
  0x93   :  { %1053 = vmatpush1.bf16.msra.mxu1 %v1754_v54  ;;  %1013 = vmatprep.subr.bf16.mxu0 %v1759_v57 }
  0x94   :  { %1054 = vmatprep.subr.bf16.mxu1 %v1762_v58 }
  0x96   :  { %1014 = vmatpush2.bf16.msra.mxu0 %v1757_v60  ;;  %v263_v60 = vld [vmem:[%s2048_s2] sm:$0x3] }
  0x97   :  { %1055 = vmatpush2.bf16.msra.mxu1 %v1760_v61  ;;  %1015 = vmatprep.subr.bf16.mxu0 %v1765_v49  ;;  %v271_v61 = vsub.s32 1, %v2002_v43  ;;  %v268_v49 = vrot.slane %v263_v60, %v267_v59 }
  0x98   :  { %1056 = vmatprep.subr.bf16.mxu1 %v1768_v62 }
  0x99   :  { %v272_v62 = vrot.slane %v263_v60, %v271_v61 }
  0x9a   :  { %1016 = vmatpush2.bf16.msra.mxu0 %v1763_v63 }
  0x9b   :  { %1057 = vmatpush2.bf16.msra.mxu1 %v1766_v0  ;;  %1017 = vmatprep.subr.bf16.mxu0 %v1771_v1 }
  0x9c   :  { %1058 = vmatprep.subr.bf16.mxu1 %v1774_v2 }
  0x9e   :  { %1018 = vmatpush2.bf16.msra.mxu0 %v1769_v3 }
  0x9f   :  { %1059 = vmatpush2.bf16.msra.mxu1 %v1772_v4  ;;  %1019 = vmatprep.subr.bf16.mxu0 %v1777_v5 }
  0xa0   :  { %1060 = vmatprep.subr.bf16.mxu1 %v1780_v6 }
  0xa2   :  { %1020 = vmatpush2.bf16.msra.mxu0 %v1775_v7 }
  0xa3   :  { %1061 = vmatpush2.bf16.msra.mxu1 %v1778_v8  ;;  %1021 = vmatprep.subr.bf16.mxu0 %v1783_v9 }
  0xa4   :  { %1062 = vmatprep.subr.bf16.mxu1 %v1786_v10 }
  0xa6   :  { %1022 = vmatpush2.bf16.msra.mxu0 %v1781_v11 }
  0xa7   :  { %1063 = vmatpush2.bf16.msra.mxu1 %v1784_v12  ;;  %1023 = vmatprep.subr.bf16.mxu0 %v1789_v13 }
  0xa8   :  { %1064 = vmatprep.subr.bf16.mxu1 %v1792_v14 }
  0xaa   :  { %1024 = vmatpush2.bf16.msra.mxu0 %v1787_v15 }
  0xab   :  { %1065 = vmatpush2.bf16.msra.mxu1 %v1790_v16  ;;  %1025 = vmatprep.subr.bf16.mxu0 %v1795_v17 }
  0xac   :  { %1066 = vmatprep.subr.bf16.mxu1 %v1798_v18 }
  0xae   :  { %1026 = vmatpush2.bf16.msra.mxu0 %v1793_v19 }
  0xaf   :  { %1067 = vmatpush2.bf16.msra.mxu1 %v1796_v20  ;;  %1027 = vmatprep.subr.bf16.mxu0 %v1801_v21  ;;  %v1827_v20 = vld [vmem:[#allocation8 + $0x10] sm:$0xff]   ;;  %v1828_v21 = vld [vmem:[#allocation8 + $0x8] sm:$0xff]  }
  0xb0   :  { %1068 = vmatprep.subr.bf16.mxu1 %v1804_v22  ;;  %v1829_v22 = vld [vmem:[#allocation8] sm:$0xff]  }
  0xb2   :  { %1028 = vmatpush2.bf16.msra.mxu0 %v1799_v23 }
  0xb3   :  { %1069 = vmatpush2.bf16.msra.mxu1 %v1802_v24  ;;  %1549 = vmatprep.subr.bf16.mxu0 %v1806_v27  ;;  %v1523_v24 = vld [vmem:[%s2050_s4] ss:$0 sm:$0xff]  ;;  %s1910_s4 = scalar_lea.vmem %s1385_s27, 32 }
  0xb4   :  { %1580 = vmatprep.subr.bf16.mxu1 %v1947_v45  ;;  %p1911_p6 = scmp.ne.s32.totalorder %s1385_s27, %s1910_s4  ;;  %p1916_p8 = scmp.lt.s32.totalorder %s1910_s4, %s1910_s4 }
  0xb5   :  { %1030 = vmatmul.mubr.bf16.vlgmr.msra.gmra.mxu0 %v131_v25 }
  0xb6   :  { %1071 = vmatmul.mubr.bf16.vlgmr.msra.gmra.mxu1 %v133_v26  ;;  %1550 = vmatpush3.bf16.msra.mxu0 %v1807_v28  ;;  %p1917_p9 = por %p1916_p8, %p1915_p7 }
  0xb7   :  { %1551 = vmatprep.subr.bf16.mxu0 %v1808_v29  ;;  %1581 = vmatpush3.bf16.msra.mxu1 %v1822_v44 }
  0xb8   :  { %1582 = vmatprep.subr.bf16.mxu1 %v1947_v45  ;;  %1596 = vmatprep.mubr.msk.bf16.mxu1 %vm1948_vm2, %v1947_v45  ;;  %p1918_p10 = pnand %p1917_p9, %p1911_p6 }
  0xba   :  { %1552 = vmatpush3.bf16.msra.mxu0 %v1809_v30 }
  0xbb   :  { %1553 = vmatprep.subr.bf16.mxu0 %v1810_v31  ;;  %1583 = vmatpush3.bf16.msra.mxu1 %v1823_v46 }
  0xbc   :  { %1584 = vmatprep.subr.bf16.mxu1 %v1947_v45 }
  0xbe   :  { %1554 = vmatpush3.bf16.msra.mxu0 %v1811_v32 }
  0xbf   :  { %1555 = vmatprep.subr.bf16.mxu0 %v1812_v33  ;;  %1585 = vmatpush3.bf16.msra.mxu1 %v1824_v47  ;;  %v1540_v33 = vld [vmem:[%s2052_s6] ss:$0 sm:$0xff] }
  0xc0   :  { %1586 = vmatprep.subr.bf16.mxu1 %v1947_v45 }
  0xc2   :  { %1556 = vmatpush3.bf16.msra.mxu0 %v1813_v34 }
  0xc3   :  { %1557 = vmatprep.subr.bf16.mxu0 %v1814_v35  ;;  %1587 = vmatpush3.bf16.msra.mxu1 %v1825_v48 }
  0xc4   :  { %1588 = vmatprep.subr.bf16.mxu1 %v1947_v45 }
  0xc6   :  { %1558 = vmatpush3.bf16.msra.mxu0 %v1815_v36 }
  0xc7   :  { %1559 = vmatprep.subr.bf16.mxu0 %v1816_v37  ;;  %1589 = vmatpush3.bf16.msra.mxu1 %v1826_v50 }
  0xc8   :  { %1590 = vmatprep.subr.bf16.mxu1 %v1947_v45 }
  0xca   :  { %1560 = vmatpush3.bf16.msra.mxu0 %v1817_v38 }
  0xcb   :  { %1561 = vmatprep.subr.bf16.mxu0 %v1818_v39  ;;  %1591 = vmatpush3.bf16.msra.mxu1 %v1827_v20 }
  0xcc   :  { %1592 = vmatprep.subr.bf16.mxu1 %v1947_v45 }
  0xce   :  { %1562 = vmatpush3.bf16.msra.mxu0 %v1819_v40 }
  0xcf   :  { %1563 = vmatprep.subr.bf16.mxu0 %v1820_v41  ;;  %1593 = vmatpush3.bf16.msra.mxu1 %v1828_v21 }
  0xd0   :  { %1594 = vmatprep.subr.bf16.mxu1 %v1947_v45 }
  0xd2   :  { %1564 = vmatpush3.bf16.msra.mxu0 %v1821_v42 }
  0xd3   :  { %1595 = vmatpush3.bf16.msra.mxu1 %v1829_v22 }
 0x135   :  { %v949_v51 = vpop.f32.mrf.mxu0 }
 0x136   :  { %v990_v52 = vpop.f32.mrf.mxu1  ;;  %v950_v63 = vadd.f32 %v949_v51, %v268_v49 }
 0x137   :  { %v951_v53 = vpop.f32.mrf.mxu0 }
 0x138   :  { %v992_v54 = vpop.f32.mrf.mxu1  ;;  %v952_v0 = vadd.f32 %v951_v53, %v272_v62  ;;  %v991_v1 = vadd.f32 %v990_v52, %v950_v63 }
 0x139   :  { %v953_v55 = vpop.f32.mrf.mxu0 }
 0x13a   :  { %v994_v56 = vpop.f32.mrf.mxu1  ;;  %v993_v4 = vadd.f32 %v992_v54, %v952_v0 }
 0x13b   :  { %v954_v57 = vpop.f32.mrf.mxu0 }
 0x13c   :  { %v995_v58 = vpop.f32.mrf.mxu1 }
 0x175   :  { %v1031_v2 = vpop.f32.mrf.mxu0 }
 0x176   :  { %v1072_v3 = vpop.f32.mrf.mxu1  ;;  %v1032_v5 = vadd.f32 %v1031_v2, %v991_v1 }
 0x177   :  { %v1033_v6 = vpop.f32.mrf.mxu0 }
 0x178   :  { %v1074_v7 = vpop.f32.mrf.mxu1  ;;  %v1073_v8 = vadd.f32 %v1072_v3, %v1032_v5  ;;  %v1034_v9 = vadd.f32 %v1033_v6, %v993_v4 }
 0x179   :  { %v1035_v10 = vpop.f32.mrf.mxu0 }
 0x17a   :  { %v1076_v11 = vpop.f32.mrf.mxu1  ;;  %vm1079_vm0 = vcmp.gt.f32.partialorder %v1073_v8, 0.0  ;;  %v1081_v12 = vmul.f32 0.01, %v1073_v8  ;;  %v1075_v13 = vadd.f32 %v1074_v7, %v1034_v9 }
 0x17b   :  { %v1036_v14 = vpop.f32.mrf.mxu0 }
 0x17c   :  { %v1077_v43 = vpop.f32.mrf.mxu1  ;;  %vm1080_vm1 = vcmp.gt.f32.partialorder %v1075_v13, 0.0  ;;  %v1082_v15 = vmul.f32 0.01, %v1075_v13  ;;  %v1083_v16 = vsel %vm1079_vm0, %v1073_v8, %v1081_v12 }
 0x17d   :  { %v1085_v19 = vpack.c.bf16 %v1083_v16, %v1083_v16 }
 0x17e   :  { %v1084_v17 = vsel %vm1080_vm1, %v1075_v13, %v1082_v15 }
 0x17f   :  { %v1086_v18 = vpack.c.bf16 %v1084_v17, %v1084_v17 }
 0x181   :  { %1254 = vmatprep.mubr.bf16.mxu0 %v1086_v18 }
 0x182   :  { %1255 = vmatmul.mubr.bf16.vlgmr.msra.gmra.mxu0 %v1085_v19 }
 0x242   :  { %v1565_v23 = vpop.f32.mrf.mxu0 }
 0x244   :  { %v1566_v25 = vpop.f32.mrf.mxu0 }
 0x245   :  { %v1567_v26 = vadd.f32 %v1566_v25, %v1565_v23 }
 0x246   :  { %v1568_v27 = vpop.f32.mrf.mxu0 }
 0x247   :  { %v1257_v28 = vadd.f32 %v1567_v26, %v1523_v24 }
 0x248   :  { %v1569_v29 = vpop.f32.mrf.mxu0 }
 0x249   :  { %vm1262_vm3 = vcmp.gt.f32.partialorder %v1257_v28, 0.0  ;;  %v1263_v30 = vmul.f32 0.01, %v1257_v28 }
 0x24b   :  { %v1264_v31 = vsel %vm1262_vm3, %v1257_v28, %v1263_v30 }
 0x24c   :  { %v1265_v32 = vpack.c.bf16 %v1264_v31, %v1264_v31 }
 0x24e   :  { %1597 = vmatmul.mubr.bf16.vlgmr.msra.gmra.mxu1 %v1265_v32 }
 0x30e   :  { %v1371_v34 = vpop.f32.mrf.mxu1 }
 0x30f   :  { %v1372_v35 = vadd.f32 %v1540_v33, %v1371_v34 }
 0x310   :  { %v1598_v36 = vpop.f32.mrf.mxu1 }
 0x311   :  { %1377 = vst [vmem:[#allocation10] sm:$0x3] %v1372_v35 }
 0x312   :  { %v1374_v37 = vpop.f32.mrf.mxu1 }
 0x313   :  { %1921 = shalt.err (!%p1918_p10)
}
 0x314   :  { %1387 = dma.vmem_to_hbm [thread:$0]  %s1385_s27, 32, %s2053_s7, [#allocation4]   ;;  %v1599_v38 = vpop.f32.mrf.mxu1 }
 0x315   :  { %1936 = dma.done.wait [#allocation4], 32  }
 0x316   :  { %1937 = vsyncadd [#allocation4], 4294967264 }
 0x317   :  { %1391 = vsyncpa [#allocation3], 1 }
 0x318   :  { %1392 = vsyncpa [#allocation6], 1 }
 0x319   :  { %1393 = vsyncpa [#allocation9], 1 }
 0x31a   :  { %1394 = vsyncpa [#allocation4], 1 }

</bundles_post_ra>
